<compile_context>
chip_gen: v7x
topology: tpu7x:2x2x1
jax: 0.10.0
libtpu: 0.0.40
codegen_flags: <defaults>
</compile_context>

<pallas_src>
import functools

import jax
import jax.numpy as jnp
from jax.experimental import pallas as pl
from jax.experimental.pallas import tpu as pltpu


def _masker_kernel(x1_ref, x2_ref, w0a_ref, w0b_ref, w1_ref, gamma_ref, beta_ref,
                   w2_ref, o_ref, sum_ref, sumsq_ref, scale_ref, shift_ref,
                   *, m_total, eps):
    # x1_ref/x2_ref: (4, TM) bf16     w0a_ref/w0b_ref: (64, 4) bf16
    # w1_ref: (64, 64) bf16           gamma_ref/beta_ref: (64, 1) f32
    # w2_ref: (1, 64) bf16            o_ref: (1, TM) f32
    # sum/sumsq/scale/shift scratch: (64, 1) f32
    p = pl.program_id(0)   # 0 = stats pass, 1 = normalize/output pass
    n = pl.program_id(1)   # batch index
    t = pl.program_id(2)   # pixel-tile index

    @pl.when((p == 0) & (n == 0) & (t == 0))
    def _init_stats():
        sum_ref[...] = jnp.zeros_like(sum_ref)
        sumsq_ref[...] = jnp.zeros_like(sumsq_ref)

    # Recompute h1/h2 in both passes (cheaper than round-tripping (64, M) f32).
    h1 = (jnp.dot(w0a_ref[...], x1_ref[...], preferred_element_type=jnp.float32)
          + jnp.dot(w0b_ref[...], x2_ref[...], preferred_element_type=jnp.float32))
    h1 = jnp.where(h1 > 0, h1, 0.2 * h1)                        # LeakyReLU(0.2)
    h2 = jnp.dot(w1_ref[...], h1.astype(jnp.bfloat16),
                 preferred_element_type=jnp.float32)            # (64, TM) f32

    @pl.when(p == 0)
    def _accumulate():
        sum_ref[...] += jnp.sum(h2, axis=1, keepdims=True)
        sumsq_ref[...] += jnp.sum(h2 * h2, axis=1, keepdims=True)

    @pl.when((p == 0)
             & (n == pl.num_programs(1) - 1)
             & (t == pl.num_programs(2) - 1))
    def _finalize_stats():
        inv_m = 1.0 / m_total
        mean = sum_ref[...] * inv_m
        # E[x^2] - E[x]^2 in f32; clamp guards tiny negative from rounding.
        var = jnp.maximum(sumsq_ref[...] * inv_m - mean * mean, 0.0)
        inv_std = jax.lax.rsqrt(var + eps)
        scale = gamma_ref[...] * inv_std
        scale_ref[...] = scale
        shift_ref[...] = beta_ref[...] - mean * scale

    @pl.when(p == 1)
    def _normalize_and_output():
        h2n = h2 * scale_ref[...] + shift_ref[...]              # fused BN affine
        h2n = jnp.where(h2n > 0, h2n, 0.2 * h2n)                # LeakyReLU(0.2)
        logits = jnp.dot(w2_ref[...], h2n.astype(jnp.bfloat16),
                         preferred_element_type=jnp.float32)    # (1, TM)
        o_ref[...] = jax.nn.sigmoid(logits)


def _pick_tile(hw):
    # Largest lane-dense (multiple of 128) tile that divides H*W; fall back to
    # the full spatial extent (block dim == array dim is always legal).
    for tm in (2048, 1024, 512, 256, 128):
        if hw % tm == 0:
            return tm
    return hw


def masker_forward(vec1, vec2, w0, w1, gamma, beta, w2, *, eps=1e-5):
    """vec1, vec2: NCHW f32 with nc//2 channels each.  w0:(ndf,nc) w1:(ndf,ndf)
    gamma,beta:(ndf,) w2:(1,ndf)  (PyTorch Conv2d weights with the 1x1 squeezed).
    Returns (N, 1, H, W) f32."""
    N, c_half, H, W = vec1.shape
    assert vec2.shape == vec1.shape
    HW = H * W
    ndf, nc = w0.shape
    assert nc == 2 * c_half

    # Pure reshapes (no channel/pixel permutation) + bf16 cast for the MXU path.
    x1 = vec1.reshape(N, c_half, HW).astype(jnp.bfloat16)
    x2 = vec2.reshape(N, c_half, HW).astype(jnp.bfloat16)
    w0a = w0[:, :c_half].astype(jnp.bfloat16)      # acts on vec1's channels
    w0b = w0[:, c_half:].astype(jnp.bfloat16)      # acts on vec2's channels
    w1b = w1.astype(jnp.bfloat16)
    w2b = w2.reshape(1, ndf).astype(jnp.bfloat16)
    g = gamma.reshape(ndf, 1).astype(jnp.float32)
    b = beta.reshape(ndf, 1).astype(jnp.float32)

    TM = _pick_tile(HW)
    T = HW // TM
    m_total = float(N * HW)

    kernel = functools.partial(_masker_kernel, m_total=m_total, eps=eps)

    # Advisory cost estimate (two passes over layer0/layer1, one over layer2).
    flops = int(N * HW * (2 * (2 * nc * ndf + 2 * ndf * ndf) + 2 * ndf))
    bytes_accessed = int(2 * 2 * (x1.size + x2.size)      # bf16 inputs read twice
                         + N * HW * 4                     # f32 output
                         + (w0.size + w1.size + w2.size) * 2)

    out = pl.pallas_call(
        kernel,
        out_shape=jax.ShapeDtypeStruct((N, 1, HW), jnp.float32),
        grid_spec=pltpu.PrefetchScalarGridSpec(
            num_scalar_prefetch=0,
            grid=(2, N, T),
            in_specs=[
                pl.BlockSpec((None, c_half, TM), lambda p, n, t: (n, 0, t)),  # x1
                pl.BlockSpec((None, c_half, TM), lambda p, n, t: (n, 0, t)),  # x2
                pl.BlockSpec((ndf, c_half), lambda p, n, t: (0, 0)),          # w0a
                pl.BlockSpec((ndf, c_half), lambda p, n, t: (0, 0)),          # w0b
                pl.BlockSpec((ndf, ndf), lambda p, n, t: (0, 0)),             # w1
                pl.BlockSpec((ndf, 1), lambda p, n, t: (0, 0)),               # gamma
                pl.BlockSpec((ndf, 1), lambda p, n, t: (0, 0)),               # beta
                pl.BlockSpec((1, ndf), lambda p, n, t: (0, 0)),               # w2
            ],
            # Lane-dense (1, TM) output blocks.  The (n*p, t*p) trick pins the
            # output block to (0, 0, 0) during the stats pass (p == 0) so no
            # garbage tiles are written back; every block is then written
            # exactly once during pass 1.
            out_specs=pl.BlockSpec((None, 1, TM), lambda p, n, t: (n * p, 0, t * p)),
            scratch_shapes=[
                pltpu.VMEM((ndf, 1), jnp.float32),   # per-channel sum
                pltpu.VMEM((ndf, 1), jnp.float32),   # per-channel sum of squares
                pltpu.VMEM((ndf, 1), jnp.float32),   # BN fused scale
                pltpu.VMEM((ndf, 1), jnp.float32),   # BN fused shift
            ],
        ),
        compiler_params=pltpu.CompilerParams(
            # BN stats carry across the pass/batch/tile axes -> all "arbitrary".
            dimension_semantics=("arbitrary", "arbitrary", "arbitrary"),
            vmem_limit_bytes=32 * 1024 * 1024,
        ),
        cost_estimate=pl.CostEstimate(
            flops=flops, transcendentals=int(N * HW), bytes_accessed=bytes_accessed),
    )(x1, x2, w0a, w0b, w1b, g, b, w2b)

    # (N, 1, HW) -> (N, 1, H, W): pure reshape, no data movement.
    return out.reshape(N, 1, H, W)


def masker_reference(vec1, vec2, w0, w1, gamma, beta, w2, eps=1e-5):
    """Pure-JAX f32 reference matching the PyTorch forward (training-mode BN)."""
    vec = jnp.concatenate((vec1, vec2), axis=1)                  # (N, 8, H, W)
    N, C, H, W = vec.shape
    x = vec.reshape(N, C, H * W)
    h1 = jnp.einsum("oc,nch->noh", w0, x)
    h1 = jnp.where(h1 > 0, h1, 0.2 * h1)
    h2 = jnp.einsum("oc,nch->noh", w1, h1)
    mean = jnp.mean(h2, axis=(0, 2), keepdims=True)
    var = jnp.mean((h2 - mean) ** 2, axis=(0, 2), keepdims=True)  # biased var
    h2n = (h2 - mean) * jax.lax.rsqrt(var + eps)
    h2n = h2n * gamma.reshape(1, -1, 1) + beta.reshape(1, -1, 1)
    h2n = jnp.where(h2n > 0, h2n, 0.2 * h2n)
    logits = jnp.einsum("oc,nch->noh", w2, h2n)
    return jax.nn.sigmoid(logits).reshape(N, 1, H, W)


if __name__ == "__main__":
    key = jax.random.PRNGKey(0)
    k1, k2, k3, k4, k5 = jax.random.split(key, 5)

    nc, ndf = 8, 64
    N, H, W = 2, 16, 16

    # Each input carries nc//2 = 4 channels; concat (done implicitly in-kernel)
    # gives the 8-channel input of the PyTorch module.
    vec1 = jax.random.normal(k1, (N, nc // 2, H, W), dtype=jnp.float32)
    vec2 = jax.random.normal(k2, (N, nc // 2, H, W), dtype=jnp.float32)

    # PyTorch Conv2d weights (out, in, 1, 1) with the trailing 1x1 squeezed.
    w0 = 0.1 * jax.random.normal(k3, (ndf, nc), dtype=jnp.float32)    # layer0
    w1 = 0.1 * jax.random.normal(k4, (ndf, ndf), dtype=jnp.float32)   # layer1
    w2 = 0.1 * jax.random.normal(k5, (1, ndf), dtype=jnp.float32)     # layer2
    gamma = jnp.ones((ndf,), dtype=jnp.float32)                       # bn1.weight
    beta = jnp.zeros((ndf,), dtype=jnp.float32)                       # bn1.bias

    out = masker_forward(vec1, vec2, w0, w1, gamma, beta, w2)
    out = jax.block_until_ready(out)
    assert out.shape == (N, 1, H, W), out.shape
    assert bool(jnp.all(jnp.isfinite(out)))

    # Loose tolerance: kernel runs the matmuls in bf16 (f32 accumulation).
    ref = masker_reference(vec1, vec2, w0, w1, gamma, beta, w2)
    max_err = float(jnp.max(jnp.abs(out - ref)))
    assert max_err < 5e-2, f"max abs err vs f32 reference: {max_err}"

    print("KERNEL_OK")
</pallas_src>

<mosaic_0001>
module attributes {stable_mosaic.version = 11 : i64} {
  func.func @_masker_kernel(%arg0: i32, %arg1: i32, %arg2: i32, %arg3: memref<1x4x256xbf16, #tpu.memory_space<vmem>>, %arg4: memref<1x4x256xbf16, #tpu.memory_space<vmem>>, %arg5: memref<64x4xbf16, #tpu.memory_space<vmem>>, %arg6: memref<64x4xbf16, #tpu.memory_space<vmem>>, %arg7: memref<64x64xbf16, #tpu.memory_space<vmem>>, %arg8: memref<64x1xf32, #tpu.memory_space<vmem>>, %arg9: memref<64x1xf32, #tpu.memory_space<vmem>>, %arg10: memref<1x64xbf16, #tpu.memory_space<vmem>>, %arg11: memref<1x1x256xf32, #tpu.memory_space<vmem>>, %arg12: memref<64x1xf32, #tpu.memory_space<vmem>>, %arg13: memref<64x1xf32, #tpu.memory_space<vmem>>, %arg14: memref<64x1xf32, #tpu.memory_space<vmem>>, %arg15: memref<64x1xf32, #tpu.memory_space<vmem>>) attributes {dimension_semantics = [#tpu.dimension_semantics<arbitrary>, #tpu.dimension_semantics<arbitrary>, #tpu.dimension_semantics<arbitrary>], iteration_bounds = array<i64: 2, 2, 1>, scalar_prefetch = 0 : i64, scratch_operands = 4 : i64, tpu.core_type = #tpu.core_type<tc>, window_params = [{transform_indices = @transform_0, window_bounds = array<i64: 1, 4, 256>}, {transform_indices = @transform_1, window_bounds = array<i64: 1, 4, 256>}, {pipeline_mode = #tpu.pipeline_mode<synchronous>, transform_indices = @transform_2, window_bounds = array<i64: 64, 4>}, {pipeline_mode = #tpu.pipeline_mode<synchronous>, transform_indices = @transform_3, window_bounds = array<i64: 64, 4>}, {pipeline_mode = #tpu.pipeline_mode<synchronous>, transform_indices = @transform_4, window_bounds = array<i64: 64, 64>}, {pipeline_mode = #tpu.pipeline_mode<synchronous>, transform_indices = @transform_5, window_bounds = array<i64: 64, 1>}, {pipeline_mode = #tpu.pipeline_mode<synchronous>, transform_indices = @transform_6, window_bounds = array<i64: 64, 1>}, {pipeline_mode = #tpu.pipeline_mode<synchronous>, transform_indices = @transform_7, window_bounds = array<i64: 1, 64>}, {transform_indices = @transform_8, window_bounds = array<i64: 1, 1, 256>}]} {
    %c0_i32 = arith.constant 0 : i32
    %0 = arith.cmpi eq, %arg0, %c0_i32 : i32
    %c0_i32_0 = arith.constant 0 : i32
    %1 = arith.cmpi eq, %arg1, %c0_i32_0 : i32
    %2 = arith.andi %0, %1 : i1
    %c0_i32_1 = arith.constant 0 : i32
    %3 = arith.cmpi eq, %arg2, %c0_i32_1 : i32
    %4 = arith.andi %2, %3 : i1
    %5 = arith.extui %4 : i1 to i32
    %c0_i32_2 = arith.constant 0 : i32
    %6 = arith.cmpi ne, %5, %c0_i32_2 : i32
    scf.if %6 {
      %cst_25 = arith.constant 0.000000e+00 : f32
      %37 = vector.broadcast %cst_25 : f32 to vector<64x1xf32>
      %c0_26 = arith.constant 0 : index
      %c0_27 = arith.constant 0 : index
      %38 = vector.load %arg12[%c0_26, %c0_27] : memref<64x1xf32, #tpu.memory_space<vmem>>, vector<64x1xf32>
      tpu.vector_store %arg12[%c0_26, %c0_27], %37 {strides = array<i32>} : memref<64x1xf32, #tpu.memory_space<vmem>>, vector<64x1xf32>,
      %cst_28 = arith.constant 0.000000e+00 : f32
      %39 = vector.broadcast %cst_28 : f32 to vector<64x1xf32>
      %c0_29 = arith.constant 0 : index
      %c0_30 = arith.constant 0 : index
      %40 = vector.load %arg13[%c0_29, %c0_30] : memref<64x1xf32, #tpu.memory_space<vmem>>, vector<64x1xf32>
      tpu.vector_store %arg13[%c0_29, %c0_30], %39 {strides = array<i32>} : memref<64x1xf32, #tpu.memory_space<vmem>>, vector<64x1xf32>,
    } else {
    }
    %c0 = arith.constant 0 : index
    %c0_3 = arith.constant 0 : index
    %7 = vector.load %arg5[%c0, %c0_3] : memref<64x4xbf16, #tpu.memory_space<vmem>>, vector<64x4xbf16>
    %c0_4 = arith.constant 0 : index
    %c0_5 = arith.constant 0 : index
    %c0_6 = arith.constant 0 : index
    %8 = vector.load %arg3[%c0_4, %c0_5, %c0_6] : memref<1x4x256xbf16, #tpu.memory_space<vmem>>, vector<1x4x256xbf16>
    %9 = vector.shape_cast %8 : vector<1x4x256xbf16> to vector<4x256xbf16>
    %cst = arith.constant dense<0.000000e+00> : vector<64x256xf32>
    %10 = tpu.matmul %7, %9, %cst {dimension_numbers = #tpu.dot_dimension_numbers<[1], [0], [0], [1], [0, 0, 1, 1], [], []>} : vector<64x4xbf16>, vector<4x256xbf16>, vector<64x256xf32> -> vector<64x256xf32>
    %c0_7 = arith.constant 0 : index
    %c0_8 = arith.constant 0 : index
    %11 = vector.load %arg6[%c0_7, %c0_8] : memref<64x4xbf16, #tpu.memory_space<vmem>>, vector<64x4xbf16>
    %c0_9 = arith.constant 0 : index
    %c0_10 = arith.constant 0 : index
    %c0_11 = arith.constant 0 : index
    %12 = vector.load %arg4[%c0_9, %c0_10, %c0_11] : memref<1x4x256xbf16, #tpu.memory_space<vmem>>, vector<1x4x256xbf16>
    %13 = vector.shape_cast %12 : vector<1x4x256xbf16> to vector<4x256xbf16>
    %cst_12 = arith.constant dense<0.000000e+00> : vector<64x256xf32>
    %14 = tpu.matmul %11, %13, %cst_12 {dimension_numbers = #tpu.dot_dimension_numbers<[1], [0], [0], [1], [0, 0, 1, 1], [], []>} : vector<64x4xbf16>, vector<4x256xbf16>, vector<64x256xf32> -> vector<64x256xf32>
    %15 = arith.addf %10, %14 : vector<64x256xf32>
    %cst_13 = arith.constant 0.000000e+00 : f32
    %16 = vector.broadcast %cst_13 : f32 to vector<64x256xf32>
    %17 = arith.cmpf ogt, %15, %16 : vector<64x256xf32>
    %cst_14 = arith.constant 2.000000e-01 : f32
    %18 = vector.broadcast %cst_14 : f32 to vector<64x256xf32>
    %19 = arith.mulf %18, %15 : vector<64x256xf32>
    %20 = arith.select %17, %15, %19 : vector<64x256xi1>, vector<64x256xf32>
    %c0_15 = arith.constant 0 : index
    %c0_16 = arith.constant 0 : index
    %21 = vector.load %arg7[%c0_15, %c0_16] : memref<64x64xbf16, #tpu.memory_space<vmem>>, vector<64x64xbf16>
    %22 = arith.truncf %20 : vector<64x256xf32> to vector<64x256xbf16>
    %cst_17 = arith.constant dense<0.000000e+00> : vector<64x256xf32>
    %23 = tpu.matmul %21, %22, %cst_17 {dimension_numbers = #tpu.dot_dimension_numbers<[1], [0], [0], [1], [0, 0, 1, 1], [], []>} : vector<64x64xbf16>, vector<64x256xbf16>, vector<64x256xf32> -> vector<64x256xf32>
    %c0_i32_18 = arith.constant 0 : i32
    %24 = arith.cmpi eq, %arg0, %c0_i32_18 : i32
    %25 = arith.extui %24 : i1 to i32
    %c0_i32_19 = arith.constant 0 : i32
    %26 = arith.cmpi ne, %25, %c0_i32_19 : i32
    scf.if %26 {
      %c0_25 = arith.constant 0 : index
      %c0_26 = arith.constant 0 : index
      %37 = vector.load %arg12[%c0_25, %c0_26] : memref<64x1xf32, #tpu.memory_space<vmem>>, vector<64x1xf32>
      %cst_27 = arith.constant dense<0.000000e+00> : vector<64xf32>
      %38 = vector.multi_reduction <add>, %23, %cst_27 [1] : vector<64x256xf32> to vector<64xf32>
      %39 = vector.shape_cast %38 : vector<64xf32> to vector<64x1xf32>
      %40 = arith.addf %37, %39 : vector<64x1xf32>
      %c0_28 = arith.constant 0 : index
      %c0_29 = arith.constant 0 : index
      %41 = vector.load %arg12[%c0_28, %c0_29] : memref<64x1xf32, #tpu.memory_space<vmem>>, vector<64x1xf32>
      tpu.vector_store %arg12[%c0_28, %c0_29], %40 {strides = array<i32>} : memref<64x1xf32, #tpu.memory_space<vmem>>, vector<64x1xf32>,
      %c0_30 = arith.constant 0 : index
      %c0_31 = arith.constant 0 : index
      %42 = vector.load %arg13[%c0_30, %c0_31] : memref<64x1xf32, #tpu.memory_space<vmem>>, vector<64x1xf32>
      %43 = arith.mulf %23, %23 : vector<64x256xf32>
      %cst_32 = arith.constant dense<0.000000e+00> : vector<64xf32>
      %44 = vector.multi_reduction <add>, %43, %cst_32 [1] : vector<64x256xf32> to vector<64xf32>
      %45 = vector.shape_cast %44 : vector<64xf32> to vector<64x1xf32>
      %46 = arith.addf %42, %45 : vector<64x1xf32>
      %c0_33 = arith.constant 0 : index
      %c0_34 = arith.constant 0 : index
      %47 = vector.load %arg13[%c0_33, %c0_34] : memref<64x1xf32, #tpu.memory_space<vmem>>, vector<64x1xf32>
      tpu.vector_store %arg13[%c0_33, %c0_34], %46 {strides = array<i32>} : memref<64x1xf32, #tpu.memory_space<vmem>>, vector<64x1xf32>,
    } else {
    }
    %c0_i32_20 = arith.constant 0 : i32
    %27 = arith.cmpi eq, %arg0, %c0_i32_20 : i32
    %c1_i32 = arith.constant 1 : i32
    %28 = arith.cmpi eq, %arg1, %c1_i32 : i32
    %29 = arith.andi %27, %28 : i1
    %c0_i32_21 = arith.constant 0 : i32
    %30 = arith.cmpi eq, %arg2, %c0_i32_21 : i32
    %31 = arith.andi %29, %30 : i1
    %32 = arith.extui %31 : i1 to i32
    %c0_i32_22 = arith.constant 0 : i32
    %33 = arith.cmpi ne, %32, %c0_i32_22 : i32
    scf.if %33 {
      %c0_25 = arith.constant 0 : index
      %c0_26 = arith.constant 0 : index
      %37 = vector.load %arg12[%c0_25, %c0_26] : memref<64x1xf32, #tpu.memory_space<vmem>>, vector<64x1xf32>
      %cst_27 = arith.constant 0.001953125 : f32
      %38 = vector.broadcast %cst_27 : f32 to vector<64x1xf32>
      %39 = arith.mulf %37, %38 : vector<64x1xf32>
      %c0_28 = arith.constant 0 : index
      %c0_29 = arith.constant 0 : index
      %40 = vector.load %arg13[%c0_28, %c0_29] : memref<64x1xf32, #tpu.memory_space<vmem>>, vector<64x1xf32>
      %cst_30 = arith.constant 0.001953125 : f32
      %41 = vector.broadcast %cst_30 : f32 to vector<64x1xf32>
      %42 = arith.mulf %40, %41 : vector<64x1xf32>
      %43 = arith.mulf %39, %39 : vector<64x1xf32>
      %44 = arith.subf %42, %43 : vector<64x1xf32>
      %cst_31 = arith.constant 0.000000e+00 : f32
      %45 = vector.broadcast %cst_31 : f32 to vector<64x1xf32>
      %46 = arith.maximumf %44, %45 : vector<64x1xf32>
      %cst_32 = arith.constant 9.99999974E-6 : f32
      %47 = vector.broadcast %cst_32 : f32 to vector<64x1xf32>
      %48 = arith.addf %46, %47 : vector<64x1xf32>
      %49 = math.rsqrt %48 : vector<64x1xf32>
      %c0_33 = arith.constant 0 : index
      %c0_34 = arith.constant 0 : index
      %50 = vector.load %arg8[%c0_33, %c0_34] : memref<64x1xf32, #tpu.memory_space<vmem>>, vector<64x1xf32>
      %51 = arith.mulf %50, %49 : vector<64x1xf32>
      %c0_35 = arith.constant 0 : index
      %c0_36 = arith.constant 0 : index
      %52 = vector.load %arg14[%c0_35, %c0_36] : memref<64x1xf32, #tpu.memory_space<vmem>>, vector<64x1xf32>
      tpu.vector_store %arg14[%c0_35, %c0_36], %51 {strides = array<i32>} : memref<64x1xf32, #tpu.memory_space<vmem>>, vector<64x1xf32>,
      %c0_37 = arith.constant 0 : index
      %c0_38 = arith.constant 0 : index
      %53 = vector.load %arg9[%c0_37, %c0_38] : memref<64x1xf32, #tpu.memory_space<vmem>>, vector<64x1xf32>
      %54 = arith.mulf %39, %51 : vector<64x1xf32>
      %55 = arith.subf %53, %54 : vector<64x1xf32>
      %c0_39 = arith.constant 0 : index
      %c0_40 = arith.constant 0 : index
      %56 = vector.load %arg15[%c0_39, %c0_40] : memref<64x1xf32, #tpu.memory_space<vmem>>, vector<64x1xf32>
      tpu.vector_store %arg15[%c0_39, %c0_40], %55 {strides = array<i32>} : memref<64x1xf32, #tpu.memory_space<vmem>>, vector<64x1xf32>,
    } else {
    }
    %c1_i32_23 = arith.constant 1 : i32
    %34 = arith.cmpi eq, %arg0, %c1_i32_23 : i32
    %35 = arith.extui %34 : i1 to i32
    %c0_i32_24 = arith.constant 0 : i32
    %36 = arith.cmpi ne, %35, %c0_i32_24 : i32
    scf.if %36 {
      %c0_25 = arith.constant 0 : index
      %c0_26 = arith.constant 0 : index
      %37 = vector.load %arg14[%c0_25, %c0_26] : memref<64x1xf32, #tpu.memory_space<vmem>>, vector<64x1xf32>
      %38 = vector.broadcast %37 : vector<64x1xf32> to vector<64x256xf32>
      %39 = arith.mulf %23, %38 : vector<64x256xf32>
      %c0_27 = arith.constant 0 : index
      %c0_28 = arith.constant 0 : index
      %40 = vector.load %arg15[%c0_27, %c0_28] : memref<64x1xf32, #tpu.memory_space<vmem>>, vector<64x1xf32>
      %41 = vector.broadcast %40 : vector<64x1xf32> to vector<64x256xf32>
      %42 = arith.addf %39, %41 : vector<64x256xf32>
      %cst_29 = arith.constant 0.000000e+00 : f32
      %43 = vector.broadcast %cst_29 : f32 to vector<64x256xf32>
      %44 = arith.cmpf ogt, %42, %43 : vector<64x256xf32>
      %cst_30 = arith.constant 2.000000e-01 : f32
      %45 = vector.broadcast %cst_30 : f32 to vector<64x256xf32>
      %46 = arith.mulf %45, %42 : vector<64x256xf32>
      %47 = arith.select %44, %42, %46 : vector<64x256xi1>, vector<64x256xf32>
      %c0_31 = arith.constant 0 : index
      %c0_32 = arith.constant 0 : index
      %48 = vector.load %arg10[%c0_31, %c0_32] : memref<1x64xbf16, #tpu.memory_space<vmem>>, vector<1x64xbf16>
      %49 = arith.truncf %47 : vector<64x256xf32> to vector<64x256xbf16>
      %cst_33 = arith.constant dense<0.000000e+00> : vector<1x256xf32>
      %50 = tpu.matmul %48, %49, %cst_33 {dimension_numbers = #tpu.dot_dimension_numbers<[1], [0], [0], [1], [0, 0, 1, 1], [], []>} : vector<1x64xbf16>, vector<64x256xbf16>, vector<1x256xf32> -> vector<1x256xf32>
      %51 = arith.negf %50 : vector<1x256xf32>
      %52 = math.exp %51 : vector<1x256xf32>
      %cst_34 = arith.constant 1.000000e+00 : f32
      %53 = vector.broadcast %cst_34 : f32 to vector<1x256xf32>
      %54 = arith.addf %53, %52 : vector<1x256xf32>
      %55 = arith.divf %53, %54 : vector<1x256xf32>
      %c0_35 = arith.constant 0 : index
      %c0_36 = arith.constant 0 : index
      %c0_37 = arith.constant 0 : index
      %56 = vector.load %arg11[%c0_35, %c0_36, %c0_37] : memref<1x1x256xf32, #tpu.memory_space<vmem>>, vector<1x1x256xf32>
      %57 = vector.shape_cast %56 : vector<1x1x256xf32> to vector<1x256xf32>
      %58 = vector.shape_cast %55 : vector<1x256xf32> to vector<1x1x256xf32>
      tpu.vector_store %arg11[%c0_35, %c0_36, %c0_37], %58 {strides = array<i32>} : memref<1x1x256xf32, #tpu.memory_space<vmem>>, vector<1x1x256xf32>,
    } else {
    }
    return
  }
  func.func @transform_0(%arg0: i32, %arg1: i32, %arg2: i32) -> (i32, i32, i32) {
    %c0_i32 = arith.constant 0 : i32
    %c0_i32_0 = arith.constant 0 : i32
    return %arg1, %c0_i32, %arg2 : i32, i32, i32
  }
  func.func @transform_1(%arg0: i32, %arg1: i32, %arg2: i32) -> (i32, i32, i32) {
    %c0_i32 = arith.constant 0 : i32
    %c0_i32_0 = arith.constant 0 : i32
    return %arg1, %c0_i32, %arg2 : i32, i32, i32
  }
  func.func @transform_2(%arg0: i32, %arg1: i32, %arg2: i32) -> (i32, i32) {
    %c0_i32 = arith.constant 0 : i32
    %c0_i32_0 = arith.constant 0 : i32
    %c0_i32_1 = arith.constant 0 : i32
    return %c0_i32, %c0_i32_0 : i32, i32
  }
  func.func @transform_3(%arg0: i32, %arg1: i32, %arg2: i32) -> (i32, i32) {
    %c0_i32 = arith.constant 0 : i32
    %c0_i32_0 = arith.constant 0 : i32
    %c0_i32_1 = arith.constant 0 : i32
    return %c0_i32, %c0_i32_0 : i32, i32
  }
  func.func @transform_4(%arg0: i32, %arg1: i32, %arg2: i32) -> (i32, i32) {
    %c0_i32 = arith.constant 0 : i32
    %c0_i32_0 = arith.constant 0 : i32
    %c0_i32_1 = arith.constant 0 : i32
    return %c0_i32, %c0_i32_0 : i32, i32
  }
  func.func @transform_5(%arg0: i32, %arg1: i32, %arg2: i32) -> (i32, i32) {
    %c0_i32 = arith.constant 0 : i32
    %c0_i32_0 = arith.constant 0 : i32
    %c0_i32_1 = arith.constant 0 : i32
    return %c0_i32, %c0_i32_0 : i32, i32
  }
  func.func @transform_6(%arg0: i32, %arg1: i32, %arg2: i32) -> (i32, i32) {
    %c0_i32 = arith.constant 0 : i32
    %c0_i32_0 = arith.constant 0 : i32
    %c0_i32_1 = arith.constant 0 : i32
    return %c0_i32, %c0_i32_0 : i32, i32
  }
  func.func @transform_7(%arg0: i32, %arg1: i32, %arg2: i32) -> (i32, i32) {
    %c0_i32 = arith.constant 0 : i32
    %c0_i32_0 = arith.constant 0 : i32
    %c0_i32_1 = arith.constant 0 : i32
    return %c0_i32, %c0_i32_0 : i32, i32
  }
  func.func @transform_8(%arg0: i32, %arg1: i32, %arg2: i32) -> (i32, i32, i32) {
    %0 = arith.muli %arg1, %arg0 : i32
    %1 = arith.muli %arg2, %arg0 : i32
    %c0_i32 = arith.constant 0 : i32
    %c0_i32_0 = arith.constant 0 : i32
    return %0, %c0_i32, %1 : i32, i32, i32
  }
}

</mosaic_0001>

<bundles_post_ra>
// kernel: tpu_custom_call.1
= control target key start
LH: loop header
LB: loop body
LE: loop exit
PB: predicated region body
PF: predicated region fallthrough
CT: control target
= control target key end

     0   :  { %13 = vsyncpa [#allocation7], 0  ;;  %s2270_s0 = inlined_call_operand.vmem [shape: bf16[2,4,256], index: 0, kind: input, shape index: {}]   ;;  %s2271_s1 = inlined_call_operand.vmem [shape: bf16[2,4,256], index: 1, kind: input, shape index: {}]   ;;  %s2272_s2 = inlined_call_operand.vmem [shape: bf16[64,4], index: 2, kind: input, shape index: {}]   ;;  %s2273_s3 = inlined_call_operand.vmem [shape: bf16[64,4], index: 3, kind: input, shape index: {}]   ;;  %s2274_s4 = inlined_call_operand.vmem [shape: bf16[64,64], index: 4, kind: input, shape index: {}]   ;;  %s2275_s5 = inlined_call_operand.vmem [shape: f32[64,1], index: 5, kind: input, shape index: {}]   ;;  %s2276_s6 = inlined_call_operand.vmem [shape: f32[64,1], index: 6, kind: input, shape index: {}]   ;;  %s2277_s7 = inlined_call_operand.vmem [shape: bf16[1,64], index: 7, kind: input, shape index: {}]   ;;  %s2278_s8 = inlined_call_operand.hbm [shape: f32[2,1,256], index: 8, kind: output, shape index: {}]  }
   0x1   :  { %15 = vsyncpa [#allocation7 + $0x1], 0  ;;  %s1810_s27 = smov 0   ;;  %s1812_s28 = smov 0  }
   0x2   :  { %s1814_s29 = smov 0   ;;  %s1816_s30 = smov 0  }
   0x3   :  { %s1818_s9 = smov 0   ;;  %s1820_s10 = smov 0  }
   0x4   :  { %s1822_s11 = smov 0   ;;  %s1824_s12 = smov 0  }
   0x5 LB: > { %s1480_s13 = sadd.s32 4294967295, %s1758_s12   ;;  %s1481_s14 = sadd.s32 4294967294, %s1758_s12   ;;  %s1758_s12 = sphi %s1824_s12, %s21_s12   ;;  %s1754_s11 = sphi %s1822_s11, %s2293_s11   ;;  %s1750_s10 = sphi %s1820_s10, %s2292_s10   ;;  %s1746_s9 = sphi %s1818_s9, %s2291_s9   ;;  %s1742_s30 = sphi %s1816_s30, %s2290_s30   ;;  %s1738_s29 = sphi %s1814_s29, %s2289_s29   ;;  %s1734_s28 = sphi %s1812_s28, %s2288_s28   ;;  %s1730_s27 = sphi %s1810_s27, %s2287_s27  }
   0x6   : > { %s36_s15 = sadd.s32 1, %s1750_s10  ;;  %s40_s16 = sadd.s32 1, %s1754_s11 }
   0x7   : > { %p38_p0 = scmp.ge.s32.totalorder %s36_s15, 2  ;;  %s226_s17 = smul.u32 %s1750_s10, %s1754_s11 }
   0x8   : > { %p245_p1 = scmp.ne.s32.totalorder %s1738_s29, %s1734_s28  ;;  %p246_p2 = scmp.eq.s32.totalorder %s1480_s13, 3 }
   0x9   : > { %s2295_s15 = smov (%p38_p0, %s36_s15), 0  ;;  %s2297_s16 = smov (!%p38_p0, %s40_s16), %s1754_s11 }
   0xa   : > { %2281 = sst [smem:[#allocation9_spill]] %s2295_s15  ;;  %p251_p3 = scmp.ne.s32.totalorder %s1734_s28, %s1730_s27 }
   0xb   : > { %p42_p4 = scmp.ge.s32.totalorder %s2297_s16, 2  ;;  %p252_p5 = scmp.eq.s32.totalorder %s1481_s14, 3 }
   0xc   : > { %p1863_p6 = por %p246_p2, %p245_p1  ;;  %p1484_p7 = scmp.ge.s32.totalorder %s1758_s12, 1 }
   0xd   : > { %s2299_s16 = smov (%p42_p4, %s2297_s16), 0  ;;  %p1870_p8 = por %p252_p5, %p251_p3 }
   0xe   : > { %2283 = sst [smem:[#allocation10_spill]] %s2299_s16  ;;  %p314_p9 = scmp.lt.s32.totalorder %s1758_s12, 5 }
   0xf   : > { %s228_s20 = smul.u32 %s2299_s16, %s2295_s15  ;;  %s235_s22 = sadd.s32 1, %s1738_s29 }
  0x10   : > { %p315_p10 = pnand %p1484_p7, %p314_p9 }
  0x11   : > { %s230_s21 = ssub.s32 %s226_s17, %s228_s20  ;;  %s358_s24 = sand.u32 (!%p315_p10), 1, %s1734_s28  }
  0x12   : > { %p233_p11 = scmp.eq.s32.totalorder %s230_s21, 0  ;;  %318 = sbr.rel (%p315_p10) target bundleno = 1192 (0x4a8), region = 52 }
  0x13   : > { %p362_p12 = scmp.lt.s32.totalorder (!%p315_p10), %s1742_s30, 1  ;;  %s1885_s25 = sshll.u32 (!%p315_p10), %s358_s24, 1 }
  0x14   : > { %s1879_s23 = scalar_select %p233_p11, %s1738_s29, %s235_s22  }
  0x15   : > { %p385_p13 = scmp.eq.s32.totalorder (!%p315_p10), %s1746_s9, 0  ;;  %p386_p0 = scmp.eq.s32.totalorder (!%p315_p10), %s1742_s30, 0 }
  0x16   : > { %s360_s15 = scalar_lea.vmem (!%p315_p10), [#allocation6], %s1885_s25 }
  0x17   : > { %p387_p1 = pnand (!%p315_p10), %p386_p0, %p385_p13 }
  0x19   : > { %s363_s26 = scalar_select %p362_p12, %s1742_s30, 1 }
  0x1a   : > { %393 = sbr.rel (%p387_p1) target bundleno = 35 (0x23), region = 56  ;;  %vm394_vm0 = vcmask (!%p387_p1), 7168   ;;  %v1760_v0 = vmov (!%p387_p1), 0.0  }
  0x1b   : > { %s1530_s13 = sshll.u32 %s363_s26, 2  ;;  %395 = vst.msk [vmem:[#allocation2] sm:$0xff] (!%p387_p1), %vm394_vm0, %v1760_v0  ;;  %396 = vst.msk [vmem:[#allocation2 + $0x8] sm:$0xff] (!%p387_p1), %vm394_vm0, %v1760_v0 }
  0x1c   : > { %s369_s20 = scalar_lea.vmem %s2270_s0, %s1530_s13  ;;  %s379_s16 = scalar_lea.vmem %s2271_s1, %s1530_s13  ;;  %397 = vst.msk [vmem:[#allocation2 + $0x10] sm:$0xff] (!%p387_p1), %vm394_vm0, %v1760_v0  ;;  %398 = vst.msk [vmem:[#allocation2 + $0x18] sm:$0xff] (!%p387_p1), %vm394_vm0, %v1760_v0 }
  0x1d   : > { %399 = vst.msk [vmem:[#allocation2 + $0x20] sm:$0xff] (!%p387_p1), %vm394_vm0, %v1760_v0  ;;  %400 = vst.msk [vmem:[#allocation2 + $0x28] sm:$0xff] (!%p387_p1), %vm394_vm0, %v1760_v0 }
  0x1e   : > { %401 = vst.msk [vmem:[#allocation2 + $0x30] sm:$0xff] (!%p387_p1), %vm394_vm0, %v1760_v0  ;;  %402 = vst.msk [vmem:[#allocation2 + $0x38] sm:$0xff] (!%p387_p1), %vm394_vm0, %v1760_v0 }
  0x1f   : > { %403 = vst.msk [vmem:[#allocation3] sm:$0xff] (!%p387_p1), %vm394_vm0, %v1760_v0  ;;  %404 = vst.msk [vmem:[#allocation3 + $0x8] sm:$0xff] (!%p387_p1), %vm394_vm0, %v1760_v0 }
  0x20   : > { %405 = vst.msk [vmem:[#allocation3 + $0x10] sm:$0xff] (!%p387_p1), %vm394_vm0, %v1760_v0  ;;  %406 = vst.msk [vmem:[#allocation3 + $0x18] sm:$0xff] (!%p387_p1), %vm394_vm0, %v1760_v0 }
  0x21   : > { %407 = vst.msk [vmem:[#allocation3 + $0x20] sm:$0xff] %vm394_vm0, %v1760_v0  ;;  %408 = vst.msk [vmem:[#allocation3 + $0x28] sm:$0xff] %vm394_vm0, %v1760_v0 }
  0x22   : > { %409 = vst.msk [vmem:[#allocation3 + $0x30] sm:$0xff] %vm394_vm0, %v1760_v0  ;;  %410 = vst.msk [vmem:[#allocation3 + $0x38] sm:$0xff] %vm394_vm0, %v1760_v0 }
  0x23 PF: > { %v1495_v1 = vld.sshfl [vmem:[%s379_s16] sm:$0x33 pattern:$0x76325410]  ;;  %vm471_vm1 = vcmask 1041408   ;;  %v1761_v4 = vmov 0  }
  0x24   : > { %v457_v2 = vcombine.high %v1495_v1, %v1495_v1  ;;  %v473_v3 = vsel %vm471_vm1, %v1495_v1, 0  ;;  %510 = vmatprep.mubr.bf16.mxu0 %v1761_v4  ;;  %530 = vmatprep.mubr.bf16.mxu1 %v1761_v4  ;;  %v1505_v5 = vld.sshfl [vmem:[%s369_s20] sm:$0x33 pattern:$0x76325410]  ;;  %vm458_vm2 = vcmask 31744  }
  0x25   : > { %v1626_v6 = vld [vmem:[%s2273_s3] sm:$0xff]   ;;  %v579_v7 = vcombine.high %v1505_v5, %v1505_v5  ;;  %v593_v8 = vsel %vm471_vm1, %v1505_v5, 0  ;;  %v1630_v9 = vld [vmem:[%s2273_s3 + $0x10] sm:$0xff]   ;;  %v1627_v10 = vld [vmem:[%s2273_s3 + $0x8] sm:$0xff]   ;;  %p1519_p2 = scmp.ne.s32.totalorder %s1746_s9, 0 }
  0x26   : > { %1496 = vmatprep.subr.msk.bf16.mxu0 %vm471_vm1, %v457_v2  ;;  %1533 = vmatprep.subr.msk.bf16.mxu1 %vm471_vm1, %v457_v2  ;;  %v1632_v11 = vld [vmem:[%s2273_s3 + $0x18] sm:$0xff]   ;;  %v1628_v12 = vld [vmem:[%s2272_s2] sm:$0xff]   ;;  %v1629_v13 = vld [vmem:[%s2272_s2 + $0x8] sm:$0xff]  }
  0x27   : > { %479 = vmatpush1.bf16.msra.mxu0 %v473_v3  ;;  %1534 = vmatpush1.bf16.msra.mxu1 %v473_v3  ;;  %v1631_v14 = vld [vmem:[%s2272_s2 + $0x10] sm:$0xff]   ;;  %v1633_v15 = vld [vmem:[%s2272_s2 + $0x18] sm:$0xff]  }
  0x28   : > { %1506 = vmatprep.subr.msk.bf16.mxu0 %vm471_vm1, %v579_v7 }
  0x2a   : > { %1497 = vmatmul.mubr.msk.bf16.vlgmr.msra.gmra.mrb[0].mxu0 %vm458_vm2, %v1626_v6  ;;  %1499 = vmatmul.mubr.msk.bf16.vlgmr.msra.gmra.mrb[0].mxu1 %vm458_vm2, %v1630_v9 }
  0x2b   : > { %599 = vmatpush1.bf16.msra.mxu0 %v593_v8  ;;  %520 = vmatprep.mubr.bf16.mxu0 %v1761_v4 }
  0x2c   : > { %540 = vmatprep.mubr.bf16.mxu1 %v1761_v4 }
  0x32   : > { %1498 = vmatmul.mubr.msk.bf16.gmra.mrb[4].mxu0 %vm458_vm2, %v1627_v10  ;;  %1500 = vmatmul.mubr.msk.bf16.gmra.mrb[4].mxu1 %vm458_vm2, %v1632_v11 }
  0x33   : > { %630 = vmatprep.mubr.bf16.mxu0 %v1761_v4  ;;  %800 = vmatprep.mubr.bf16.mxu1 %v1761_v4 }
  0x3a   : > { %1507 = vmatmul.mubr.msk.bf16.vlgmr.msra.gmra.mrb[0].mxu0 %vm458_vm2, %v1628_v12 }
  0x3b   : > { %640 = vmatprep.mubr.bf16.mxu0 %v1761_v4 }
  0x42   : > { %1508 = vmatmul.mubr.msk.bf16.gmra.mrb[4].mxu0 %vm458_vm2, %v1629_v13 }
  0x43   : > { %650 = vmatprep.mubr.bf16.mxu0 %v1761_v4 }
  0x4a   : > { %1509 = vmatmul.mubr.msk.bf16.gmra.mrb[8].mxu0 %vm458_vm2, %v1631_v14 }
  0x4b   : > { %660 = vmatprep.mubr.bf16.mxu0 %v1761_v4 }
  0x52   : > { %1510 = vmatmul.mubr.msk.bf16.gmra.mrb[12].mxu0 %vm458_vm2, %v1633_v15 }
  0xfd   : > { %v532_v16 = vpop.f32.mrb[0].mxu1 }
  0xfe   : > { %v534_v17 = vpop.f32.mrb[1].mxu1 }
  0xff   : > { %v536_v18 = vpop.f32.mrb[2].mxu1 }
 0x100   : > { %v538_v19 = vpop.f32.mrb[3].mxu1 }
 0x105   : > { %v1956_v20 = vpop.f32.mrb[4].mxu1 }
 0x106   : > { %v1958_v21 = vpop.f32.mrb[5].mxu1 }
 0x107   : > { %v1960_v22 = vpop.f32.mrb[6].mxu1 }
 0x108   : > { %v1962_v23 = vpop.f32.mrb[7].mxu1 }
 0x10d   : > { %v632_v24 = vpop.f32.mrb[0].mxu0 }
 0x10e   : > { %v687_v25 = vmul.f32 0.2, %v632_v24  ;;  %v634_v26 = vpop.f32.mrb[1].mxu0  ;;  %vm671_vm3 = vcmp.gt.f32.partialorder %v632_v24, 0.0 }
 0x10f   : > { %v688_v27 = vmul.f32 0.2, %v634_v26  ;;  %v636_v28 = vpop.f32.mrb[2].mxu0  ;;  %vm672_vm4 = vcmp.gt.f32.partialorder %v634_v26, 0.0 }
 0x110   : > { %vm673_vm5 = vcmp.gt.f32.partialorder %v636_v28, 0.0  ;;  %v689_v29 = vmul.f32 0.2, %v636_v28  ;;  %v638_v30 = vpop.f32.mrb[3].mxu0  ;;  %v703_v32 = vsel %vm671_vm3, %v632_v24, %v687_v25  ;;  %vm755_vm3 = vcmask 523264  }
 0x111   : > { %vm674_vm6 = vcmp.gt.f32.partialorder %v638_v30, 0.0  ;;  %v690_v31 = vmul.f32 0.2, %v638_v30  ;;  %v704_v34 = vsel %vm672_vm4, %v634_v26, %v688_v27  ;;  %v1636_v27 = vld [vmem:[%s2274_s4 + $0x10] sm:$0xff]   ;;  %vm884_vm4 = vcmask (!%p1519_p2), 7168  }
 0x112   : > { %v705_v33 = vsel %vm673_vm5, %v636_v28, %v689_v29  ;;  %v1637_v28 = vld [vmem:[%s2274_s4 + $0x18] sm:$0xff]  }
 0x113   : > { %v727_v35 = vpack.c.bf16 %v705_v33, %v703_v32  ;;  %v706_v36 = vsel %vm674_vm6, %v638_v30, %v690_v31 }
 0x114   : > { %v728_v37 = vpack.c.bf16 %v706_v36, %v704_v34 }
 0x115   : > { %v642_v38 = vpop.f32.mrb[4].mxu0 }
 0x116   : > { %v691_v39 = vmul.f32 0.2, %v642_v38  ;;  %v644_v40 = vpop.f32.mrb[5].mxu0  ;;  %768 = vmatprep.subr.bf16.mxu1 %v728_v37  ;;  %vm675_vm7 = vcmp.gt.f32.partialorder %v642_v38, 0.0 }
 0x117   : > { %v692_v41 = vmul.f32 0.2, %v644_v40  ;;  %v646_v42 = vpop.f32.mrb[6].mxu0  ;;  %769 = vmatpush1.bf16.msra.mxu1 %v727_v35  ;;  %vm676_vm8 = vcmp.gt.f32.partialorder %v644_v40, 0.0 }
 0x118   : > { %vm677_vm9 = vcmp.gt.f32.partialorder %v646_v42, 0.0  ;;  %v693_v43 = vmul.f32 0.2, %v646_v42  ;;  %v648_v44 = vpop.f32.mrb[7].mxu0  ;;  %v707_v46 = vsel %vm675_vm7, %v642_v38, %v691_v39 }
 0x119   : > { %vm678_vm10 = vcmp.gt.f32.partialorder %v648_v44, 0.0  ;;  %v694_v45 = vmul.f32 0.2, %v648_v44  ;;  %v708_v48 = vsel %vm676_vm8, %v644_v40, %v692_v41 }
 0x11a   : > { %v709_v47 = vsel %vm677_vm9, %v646_v42, %v693_v43 }
 0x11b   : > { %v729_v49 = vpack.c.bf16 %v709_v47, %v707_v46  ;;  %v710_v50 = vsel %vm678_vm10, %v648_v44, %v694_v45 }
 0x11c   : > { %v730_v51 = vpack.c.bf16 %v710_v50, %v708_v48 }
 0x11d   : > { %v652_v52 = vpop.f32.mrb[8].mxu0 }
 0x11e   : > { %v653_v53 = vadd.f32 %v652_v52, %v532_v16  ;;  %v654_v54 = vpop.f32.mrb[9].mxu0  ;;  %770 = vmatprep.subr.bf16.mxu1 %v730_v51 }
 0x11f   : > { %v655_v55 = vadd.f32 %v654_v54, %v534_v17  ;;  %v656_v56 = vpop.f32.mrb[10].mxu0  ;;  %771 = vmatpush1.bf16.msra.mxu1 %v729_v49 }
 0x120   : > { %v695_v57 = vmul.f32 0.2, %v653_v53  ;;  %v657_v58 = vadd.f32 %v656_v56, %v536_v18  ;;  %v658_v59 = vpop.f32.mrb[11].mxu0  ;;  %vm679_vm11 = vcmp.gt.f32.partialorder %v653_v53, 0.0 }
 0x121   : > { %v696_v60 = vmul.f32 0.2, %v655_v55  ;;  %v659_v61 = vadd.f32 %v658_v59, %v538_v19  ;;  %vm680_vm12 = vcmp.gt.f32.partialorder %v655_v55, 0.0 }
 0x122   : > { %vm681_vm13 = vcmp.gt.f32.partialorder %v657_v58, 0.0  ;;  %v697_v62 = vmul.f32 0.2, %v657_v58  ;;  %v711_v0 = vsel %vm679_vm11, %v653_v53, %v695_v57 }
 0x123   : > { %vm682_vm14 = vcmp.gt.f32.partialorder %v659_v61, 0.0  ;;  %v698_v63 = vmul.f32 0.2, %v659_v61  ;;  %v712_v5 = vsel %vm680_vm12, %v655_v55, %v696_v60 }
 0x124   : > { %v713_v1 = vsel %vm681_vm13, %v657_v58, %v697_v62 }
 0x125   : > { %v731_v2 = vpack.c.bf16 %v713_v1, %v711_v0  ;;  %v662_v3 = vpop.f32.mrb[12].mxu0  ;;  %v714_v6 = vsel %vm682_vm14, %v659_v61, %v698_v63 }
 0x126   : > { %v663_v7 = vadd.f32 %v662_v3, %v1956_v20  ;;  %v664_v8 = vpop.f32.mrb[13].mxu0  ;;  %v732_v9 = vpack.c.bf16 %v714_v6, %v712_v5 }
 0x127   : > { %v665_v10 = vadd.f32 %v664_v8, %v1958_v21  ;;  %v666_v11 = vpop.f32.mrb[14].mxu0 }
 0x128   : > { %v699_v12 = vmul.f32 0.2, %v663_v7  ;;  %v667_v13 = vadd.f32 %v666_v11, %v1960_v22  ;;  %v668_v14 = vpop.f32.mrb[15].mxu0  ;;  %772 = vmatprep.subr.bf16.mxu1 %v732_v9  ;;  %vm683_vm15 = vcmp.gt.f32.partialorder %v663_v7, 0.0  ;;  %v1634_v22 = vld [vmem:[%s2274_s4] sm:$0xff]  }
 0x129   : > { %v700_v15 = vmul.f32 0.2, %v665_v10  ;;  %v669_v16 = vadd.f32 %v668_v14, %v1962_v23  ;;  %773 = vmatpush1.bf16.msra.mxu1 %v731_v2  ;;  %vm684_vm0 = vcmp.gt.f32.partialorder %v665_v10, 0.0  ;;  %v1635_v23 = vld [vmem:[%s2274_s4 + $0x8] sm:$0xff]   ;;  %v844_v14 = vld [vmem:[#allocation2] sm:$0xff] (!%p1519_p2) }
 0x12a   : > { %vm685_vm1 = vcmp.gt.f32.partialorder %v667_v13, 0.0  ;;  %v701_v17 = vmul.f32 0.2, %v667_v13  ;;  %v715_v19 = vsel %vm683_vm15, %v663_v7, %v699_v12 }
 0x12b   : > { %vm686_vm2 = vcmp.gt.f32.partialorder %v669_v16, 0.0  ;;  %v702_v18 = vmul.f32 0.2, %v669_v16  ;;  %v716_v21 = vsel %vm684_vm0, %v665_v10, %v700_v15 }
 0x12c   : > { %v717_v20 = vsel %vm685_vm1, %v667_v13, %v701_v17  ;;  %v846_v13 = vld [vmem:[#allocation2 + $0x10] sm:$0xff] (!%p1519_p2) }
 0x12d   : > { %v733_v24 = vpack.c.bf16 %v717_v20, %v715_v19  ;;  %v718_v25 = vsel %vm686_vm2, %v669_v16, %v702_v18  ;;  %v847_v19 = vld [vmem:[#allocation2 + $0x18] sm:$0xff] (!%p1519_p2)  ;;  %v845_v20 = vld [vmem:[#allocation2 + $0x8] sm:$0xff] (!%p1519_p2) }
 0x12e   : > { %v734_v26 = vpack.c.bf16 %v718_v25, %v716_v21 }
 0x130   : > { %774 = vmatprep.subr.bf16.mxu1 %v734_v26 }
 0x131   : > { %775 = vmatpush1.bf16.msra.mxu1 %v733_v24 }
 0x134   : > { %1515 = vmatmul.mubr.msk.bf16.vlgmr.msra.gmra.mrb[8].mxu1 %vm755_vm3, %v1634_v22  ;;  %v849_v22 = vld [vmem:[#allocation2 + $0x28] sm:$0xff] (!%p1519_p2) }
 0x135   : > { %810 = vmatprep.mubr.bf16.mxu1 %v1761_v4 }
 0x13c   : > { %1516 = vmatmul.mubr.msk.bf16.gmra.mrb[12].mxu1 %vm755_vm3, %v1635_v23  ;;  %v848_v23 = vld [vmem:[#allocation2 + $0x20] sm:$0xff] (!%p1519_p2) }
 0x13d   : > { %820 = vmatprep.mubr.bf16.mxu1 %v1761_v4 }
 0x144   : > { %1517 = vmatmul.mubr.msk.bf16.gmra.mrb[16].mxu1 %vm755_vm3, %v1636_v27 }
 0x145   : > { %830 = vmatprep.mubr.bf16.mxu1 %v1761_v4 }
 0x14c   : > { %1518 = vmatmul.mubr.msk.bf16.gmra.mrb[20].mxu1 %vm755_vm3, %v1637_v28 }
 0x207   : > { %v1987_v29 = vpop.f32.mrb[8].mxu1 }
 0x208   : > { %v1989_v30 = vpop.f32.mrb[9].mxu1  ;;  %v901_v54 = vmul.f32 (!%p1519_p2), %v1987_v29, %v1987_v29 }
 0x209   : > { %v1991_v31 = vpop.f32.mrb[10].mxu1  ;;  %v852_v45 = vadd.f32 (!%p1519_p2), %v1989_v30, %v1987_v29  ;;  %v902_v55 = vmul.f32 (!%p1519_p2), %v1989_v30, %v1989_v30 }
 0x20a   : > { %v1993_v32 = vpop.f32.mrb[11].mxu1  ;;  %v903_v52 = vmul.f32 (!%p1519_p2), %v1991_v31, %v1991_v31 }
 0x20b   : > { %853 = vadd.xlane.f32.xlu0 (!%p1519_p2), %v852_v45  ;;  %v855_v47 = vadd.f32 (!%p1519_p2), %v1993_v32, %v1991_v31  ;;  %v904_v53 = vmul.f32 (!%p1519_p2), %v1993_v32, %v1993_v32  ;;  %v917_v60 = vadd.f32 (!%p1519_p2), %v902_v55, %v901_v54 }
 0x20d   : > { %v920_v59 = vadd.f32 (!%p1519_p2), %v904_v53, %v903_v52  ;;  %v894_v52 = vld [vmem:[#allocation3 + $0x8] sm:$0xff] (!%p1519_p2)  ;;  %v893_v53 = vld [vmem:[#allocation3] sm:$0xff] (!%p1519_p2) }
 0x20f   : > { %v1995_v33 = vpop.f32.mrb[12].mxu1  ;;  %856 = vadd.xlane.f32.xlu0 (!%p1519_p2), %v855_v47  ;;  %v850_v47 = vld [vmem:[#allocation2 + $0x30] sm:$0xff] (!%p1519_p2) }
 0x210   : > { %v1997_v34 = vpop.f32.mrb[13].mxu1  ;;  %v905_v58 = vmul.f32 (!%p1519_p2), %v1995_v33, %v1995_v33 }
 0x211   : > { %v1999_v35 = vpop.f32.mrb[14].mxu1  ;;  %v858_v44 = vadd.f32 (!%p1519_p2), %v1997_v34, %v1995_v33  ;;  %v906_v61 = vmul.f32 (!%p1519_p2), %v1997_v34, %v1997_v34 }
 0x212   : > { %v2001_v4 = vpop.f32.mrb[15].mxu1  ;;  %v907_v56 = vmul.f32 (!%p1519_p2), %v1999_v35, %v1999_v35 }
 0x213   : > { %859 = vadd.xlane.f32.xlu1 (!%p1519_p2), %v858_v44  ;;  %v861_v46 = vadd.f32 (!%p1519_p2), %v2001_v4, %v1999_v35  ;;  %v908_v57 = vmul.f32 (!%p1519_p2), %v2001_v4, %v2001_v4  ;;  %v923_v3 = vadd.f32 (!%p1519_p2), %v906_v61, %v905_v58  ;;  %v896_v58 = vld [vmem:[#allocation3 + $0x18] sm:$0xff] (!%p1519_p2) }
 0x215   : > { %v926_v2 = vadd.f32 (!%p1519_p2), %v908_v57, %v907_v56 }
 0x217   : > { %v2003_v36 = vpop.f32.mrb[16].mxu1  ;;  %862 = vadd.xlane.f32.xlu1 (!%p1519_p2), %v861_v46  ;;  %v851_v46 = vld [vmem:[#allocation2 + $0x38] sm:$0xff] (!%p1519_p2) }
 0x218   : > { %v2005_v37 = vpop.f32.mrb[17].mxu1  ;;  %v909_v0 = vmul.f32 (!%p1519_p2), %v2003_v36, %v2003_v36 }
 0x219   : > { %v2007_v38 = vpop.f32.mrb[18].mxu1  ;;  %v864_v49 = vadd.f32 (!%p1519_p2), %v2005_v37, %v2003_v36  ;;  %v910_v1 = vmul.f32 (!%p1519_p2), %v2005_v37, %v2005_v37 }
 0x21a   : > { %v2009_v39 = vpop.f32.mrb[19].mxu1  ;;  %v911_v62 = vmul.f32 (!%p1519_p2), %v2007_v38, %v2007_v38 }
 0x21b   : > { %v867_v48 = vadd.f32 (!%p1519_p2), %v2009_v39, %v2007_v38  ;;  %865 = vadd.xlane.f32.xlu0 (!%p1519_p2), %v864_v49  ;;  %v912_v63 = vmul.f32 (!%p1519_p2), %v2009_v39, %v2009_v39  ;;  %v929_v6 = vadd.f32 (!%p1519_p2), %v910_v1, %v909_v0  ;;  %v898_v0 = vld [vmem:[#allocation3 + $0x28] sm:$0xff] (!%p1519_p2)  ;;  %v897_v1 = vld [vmem:[#allocation3 + $0x20] sm:$0xff] (!%p1519_p2) }
 0x21c   : > { %843 = sbr.rel (%p1519_p2) target bundleno = 710 (0x2c6), region = 60 }
 0x21d   : > { %868 = vadd.xlane.f32.xlu1 (!%p1519_p2), %v867_v48  ;;  %v932_v5 = vadd.f32 (!%p1519_p2), %v912_v63, %v911_v62 }
 0x21f   : > { %v2011_v40 = vpop.f32.mrb[20].mxu1 }
 0x220   : > { %v2013_v41 = vpop.f32.mrb[21].mxu1  ;;  %v913_v9 = vmul.f32 (!%p1519_p2), %v2011_v40, %v2011_v40 }
 0x221   : > { %v2015_v42 = vpop.f32.mrb[22].mxu1  ;;  %v870_v51 = vadd.f32 (!%p1519_p2), %v2013_v41, %v2011_v40  ;;  %v914_v10 = vmul.f32 (!%p1519_p2), %v2013_v41, %v2013_v41 }
 0x222   : > { %v2017_v43 = vpop.f32.mrb[23].mxu1  ;;  %v915_v7 = vmul.f32 (!%p1519_p2), %v2015_v42, %v2015_v42 }
 0x223   : > { %v873_v50 = vadd.f32 %v2017_v43, %v2015_v42  ;;  %871 = vadd.xlane.f32.xlu0 %v870_v51  ;;  %v916_v8 = vmul.f32 %v2017_v43, %v2017_v43  ;;  %v935_v12 = vadd.f32 %v914_v10, %v913_v9 }
 0x225   : > { %874 = vadd.xlane.f32.xlu1 %v873_v50  ;;  %v938_v11 = vadd.f32 %v916_v8, %v915_v7  ;;  %v900_v7 = vld [vmem:[#allocation3 + $0x38] sm:$0xff]  ;;  %v899_v8 = vld [vmem:[#allocation3 + $0x30] sm:$0xff] }
 0x227   : > { %918 = vadd.xlane.f32.xlu0 %v917_v60 }
 0x229   : > { %921 = vadd.xlane.f32.xlu1 %v920_v59  ;;  %v895_v59 = vld [vmem:[#allocation3 + $0x10] sm:$0xff] }
 0x22b   : > { %924 = vadd.xlane.f32.xlu0 %v923_v3 }
 0x22d   : > { %927 = vadd.xlane.f32.xlu1 %v926_v2 }
 0x22f   : > { %930 = vadd.xlane.f32.xlu0 %v929_v6 }
 0x231   : > { %933 = vadd.xlane.f32.xlu1 %v932_v5 }
 0x233   : > { %936 = vadd.xlane.f32.xlu0 %v935_v12 }
 0x235   : > { %939 = vadd.xlane.f32.xlu1 %v938_v11 }
 0x298   : > { %v854_v16 = vpop.xlane.xlu0 %853 }
 0x299   : > { %v876_v18 = vadd.f32 %v854_v16, %v844_v14 }
 0x29b   : > { %885 = vst.msk [vmem:[#allocation2] sm:$0xff] %vm884_vm4, %v876_v18 }
 0x29c   : > { %v857_v21 = vpop.xlane.xlu0 %856 }
 0x29d   : > { %v877_v26 = vadd.f32 %v857_v21, %v845_v20 }
 0x29f   : > { %886 = vst.msk [vmem:[#allocation2 + $0x8] sm:$0xff] %vm884_vm4, %v877_v26 }
 0x2a0   : > { %v860_v15 = vpop.xlane.xlu1 %859 }
 0x2a1   : > { %v878_v17 = vadd.f32 %v860_v15, %v846_v13 }
 0x2a3   : > { %887 = vst.msk [vmem:[#allocation2 + $0x10] sm:$0xff] %vm884_vm4, %v878_v17 }
 0x2a4   : > { %v863_v24 = vpop.xlane.xlu1 %862 }
 0x2a5   : > { %v879_v25 = vadd.f32 %v863_v24, %v847_v19 }
 0x2a7   : > { %888 = vst.msk [vmem:[#allocation2 + $0x18] sm:$0xff] %vm884_vm4, %v879_v25 }
 0x2a8   : > { %v866_v28 = vpop.xlane.xlu0 %865 }
 0x2a9   : > { %v880_v45 = vadd.f32 %v866_v28, %v848_v23 }
 0x2aa   : > { %v869_v27 = vpop.xlane.xlu1 %868 }
 0x2ab   : > { %v881_v44 = vadd.f32 %v869_v27, %v849_v22  ;;  %889 = vst.msk [vmem:[#allocation2 + $0x20] sm:$0xff] %vm884_vm4, %v880_v45 }
 0x2ad   : > { %890 = vst.msk [vmem:[#allocation2 + $0x28] sm:$0xff] %vm884_vm4, %v881_v44 }
 0x2b0   : > { %v872_v49 = vpop.xlane.xlu0 %871 }
 0x2b1   : > { %v882_v51 = vadd.f32 %v872_v49, %v850_v47 }
 0x2b2   : > { %v875_v48 = vpop.xlane.xlu1 %874 }
 0x2b3   : > { %v883_v50 = vadd.f32 %v875_v48, %v851_v46  ;;  %891 = vst.msk [vmem:[#allocation2 + $0x30] sm:$0xff] %vm884_vm4, %v882_v51 }
 0x2b4   : > { %v919_v55 = vpop.xlane.xlu0 %918 }
 0x2b5   : > { %892 = vst.msk [vmem:[#allocation2 + $0x38] sm:$0xff] %vm884_vm4, %v883_v50  ;;  %v941_v57 = vadd.f32 %v919_v55, %v893_v53 }
 0x2b6   : > { %v922_v54 = vpop.xlane.xlu1 %921 }
 0x2b7   : > { %v942_v56 = vadd.f32 %v922_v54, %v894_v52  ;;  %949 = vst.msk [vmem:[#allocation3] sm:$0xff] %vm884_vm4, %v941_v57 }
 0x2b8   : > { %v925_v61 = vpop.xlane.xlu0 %924 }
 0x2b9   : > { %950 = vst.msk [vmem:[#allocation3 + $0x8] sm:$0xff] %vm884_vm4, %v942_v56  ;;  %v943_v63 = vadd.f32 %v925_v61, %v895_v59 }
 0x2ba   : > { %v928_v60 = vpop.xlane.xlu1 %927 }
 0x2bb   : > { %v944_v62 = vadd.f32 %v928_v60, %v896_v58  ;;  %951 = vst.msk [vmem:[#allocation3 + $0x10] sm:$0xff] %vm884_vm4, %v943_v63 }
 0x2bc   : > { %v931_v3 = vpop.xlane.xlu0 %930 }
 0x2bd   : > { %952 = vst.msk [vmem:[#allocation3 + $0x18] sm:$0xff] %vm884_vm4, %v944_v62  ;;  %v945_v6 = vadd.f32 %v931_v3, %v897_v1 }
 0x2be   : > { %v934_v2 = vpop.xlane.xlu1 %933 }
 0x2bf   : > { %v946_v5 = vadd.f32 %v934_v2, %v898_v0  ;;  %953 = vst.msk [vmem:[#allocation3 + $0x20] sm:$0xff] %vm884_vm4, %v945_v6 }
 0x2c0   : > { %v937_v10 = vpop.xlane.xlu0 %936 }
 0x2c1   : > { %954 = vst.msk [vmem:[#allocation3 + $0x28] sm:$0xff] %vm884_vm4, %v946_v5  ;;  %v947_v12 = vadd.f32 %v937_v10, %v899_v8 }
 0x2c2   : > { %v940_v9 = vpop.xlane.xlu1 %939 }
 0x2c3   : > { %v948_v11 = vadd.f32 %v940_v9, %v900_v7  ;;  %955 = vst.msk [vmem:[#allocation3 + $0x30] sm:$0xff] %vm884_vm4, %v947_v12 }
 0x2c5   : > { %956 = vst.msk [vmem:[#allocation3 + $0x38] sm:$0xff] %vm884_vm4, %v948_v11 }
 0x2c6 PF: > { %p957_p3 = scmp.eq.s32.totalorder %s1742_s30, 1 }
 0x2c8   : > { %p958_p4 = pnand %p957_p3, %p385_p13 }
 0x2c9   : > { %v964_v13 = vld [vmem:[#allocation2] sm:$0xff] (!%p958_p4)  ;;  %v965_v17 = vld [vmem:[#allocation2 + $0x8] sm:$0xff] (!%p958_p4)  ;;  %v966_v24 = vld [vmem:[#allocation2 + $0x10] sm:$0xff] (!%p958_p4)  ;;  %vm1052_vm5 = vcmask (!%p958_p4), 7168  }
 0x2ca   : > { %963 = sbr.rel (%p958_p4) target bundleno = 750 (0x2ee), region = 64  ;;  %v980_v14 = vld [vmem:[#allocation3] sm:$0xff] (!%p958_p4)  ;;  %v2087_v15 = vmul.f32 (!%p958_p4), 0.001953125, %v964_v13  ;;  %v981_v18 = vld [vmem:[#allocation3 + $0x8] sm:$0xff] (!%p958_p4)  ;;  %v2089_v19 = vmul.f32 (!%p958_p4), 0.001953125, %v965_v17  ;;  %v982_v21 = vld [vmem:[#allocation3 + $0x10] sm:$0xff] (!%p958_p4) }
 0x2cb   : > { %v988_v16 = vmul.f32 (!%p958_p4), 0.001953125, %v980_v14  ;;  %v989_v20 = vmul.f32 (!%p958_p4), 0.001953125, %v981_v18  ;;  %v2093_v26 = vmul.f32 (!%p958_p4), 0.001953125, %v966_v24  ;;  %v990_v22 = vmul.f32 (!%p958_p4), 0.001953125, %v982_v21  ;;  %v967_v23 = vld [vmem:[#allocation2 + $0x18] sm:$0xff] (!%p958_p4)  ;;  %v968_v46 = vld [vmem:[#allocation2 + $0x20] sm:$0xff] (!%p958_p4) }
 0x2cc   : > { %v996_v25 = vmul.f32 (!%p958_p4), %v2087_v15, %v2087_v15  ;;  %v983_v27 = vld [vmem:[#allocation3 + $0x18] sm:$0xff] (!%p958_p4)  ;;  %v997_v28 = vmul.f32 (!%p958_p4), %v2089_v19, %v2089_v19  ;;  %v2097_v44 = vmul.f32 (!%p958_p4), 0.001953125, %v967_v23  ;;  %v984_v47 = vld [vmem:[#allocation3 + $0x20] sm:$0xff] (!%p958_p4)  ;;  %v2101_v50 = vmul.f32 (!%p958_p4), 0.001953125, %v968_v46  ;;  %v969_v52 = vld [vmem:[#allocation2 + $0x28] sm:$0xff] (!%p958_p4) }
 0x2cd   : > { %v991_v45 = vmul.f32 (!%p958_p4), 0.001953125, %v983_v27  ;;  %v998_v49 = vmul.f32 (!%p958_p4), %v2093_v26, %v2093_v26  ;;  %v992_v51 = vmul.f32 (!%p958_p4), 0.001953125, %v984_v47  ;;  %v985_v53 = vld [vmem:[#allocation3 + $0x28] sm:$0xff] (!%p958_p4)  ;;  %v2105_v56 = vmul.f32 (!%p958_p4), 0.001953125, %v969_v52  ;;  %v970_v58 = vld [vmem:[#allocation2 + $0x30] sm:$0xff] (!%p958_p4)  ;;  %v971_v0 = vld [vmem:[#allocation2 + $0x38] sm:$0xff] (!%p958_p4) }
 0x2ce   : > { %v1004_v48 = vsub.f32 (!%p958_p4), %v988_v16, %v996_v25  ;;  %v1005_v54 = vsub.f32 (!%p958_p4), %v989_v20, %v997_v28  ;;  %v999_v55 = vmul.f32 (!%p958_p4), %v2097_v44, %v2097_v44  ;;  %v993_v57 = vmul.f32 (!%p958_p4), 0.001953125, %v985_v53  ;;  %v986_v59 = vld [vmem:[#allocation3 + $0x30] sm:$0xff] (!%p958_p4)  ;;  %v987_v10 = vld [vmem:[#allocation3 + $0x38] sm:$0xff] (!%p958_p4)  ;;  %v1036_v47 = vld [vmem:[%s2275_s5] sm:$0xff] (!%p958_p4) }
 0x2cf   : > { %v1006_v61 = vsub.f32 (!%p958_p4), %v990_v22, %v998_v49  ;;  %v1000_v62 = vmul.f32 (!%p958_p4), %v2101_v50, %v2101_v50  ;;  %v2109_v63 = vmul.f32 (!%p958_p4), 0.001953125, %v970_v58  ;;  %v1001_v3 = vmul.f32 (!%p958_p4), %v2105_v56, %v2105_v56  ;;  %v1037_v49 = vld [vmem:[%s2275_s5 + $0x8] sm:$0xff] (!%p958_p4)  ;;  %v1038_v52 = vld [vmem:[%s2275_s5 + $0x10] sm:$0xff] (!%p958_p4) }
 0x2d0   : > { %v1012_v60 = vmax.f32 (!%p958_p4), %v1004_v48, 0.0  ;;  %v1013_v1 = vmax.f32 (!%p958_p4), %v1005_v54, 0.0  ;;  %v1007_v2 = vsub.f32 (!%p958_p4), %v991_v45, %v999_v55  ;;  %v994_v5 = vmul.f32 (!%p958_p4), 0.001953125, %v986_v59  ;;  %v1039_v55 = vld [vmem:[%s2275_s5 + $0x18] sm:$0xff] (!%p958_p4)  ;;  %v1040_v59 = vld [vmem:[%s2275_s5 + $0x20] sm:$0xff] (!%p958_p4) }
 0x2d1   : > { %v1014_v7 = vmax.f32 %v1006_v61, 0.0  ;;  %v1008_v8 = vsub.f32 %v992_v51, %v1000_v62  ;;  %v1002_v9 = vmul.f32 %v2109_v63, %v2109_v63  ;;  %v1009_v13 = vsub.f32 %v993_v57, %v1001_v3 }
 0x2d2   : > { %v1020_v6 = vadd.f32 1e-05, %v1012_v60  ;;  %v1021_v11 = vadd.f32 1e-05, %v1013_v1  ;;  %v1015_v12 = vmax.f32 %v1007_v2, 0.0  ;;  %v2115_v14 = vmul.f32 0.001953125, %v971_v0 }
 0x2d3   : > { %v1022_v16 = vadd.f32 1e-05, %v1014_v7  ;;  %v1016_v17 = vmax.f32 %v1008_v8, 0.0  ;;  %v1010_v18 = vsub.f32 %v994_v5, %v1002_v9  ;;  %v1017_v24 = vmax.f32 %v1009_v13, 0.0  ;;  %v1061_v60 = vld [vmem:[%s2276_s6] sm:$0xff]  ;;  %v1041_v0 = vld [vmem:[%s2275_s5 + $0x28] sm:$0xff] }
 0x2d4   : > { %1638 = vrsqrt.f32 %v1020_v6  ;;  %v1023_v20 = vadd.f32 1e-05, %v1015_v12  ;;  %v995_v21 = vmul.f32 0.001953125, %v987_v10  ;;  %v1003_v23 = vmul.f32 %v2115_v14, %v2115_v14  ;;  %v1062_v2 = vld [vmem:[%s2276_s6 + $0x8] sm:$0xff]  ;;  %v1042_v6 = vld [vmem:[%s2275_s5 + $0x30] sm:$0xff]  ;;  %v1064_v12 = vld [vmem:[%s2276_s6 + $0x18] sm:$0xff] }
 0x2d5   : > { %1640 = vrsqrt.f32 %v1021_v11  ;;  %v1024_v25 = vadd.f32 1e-05, %v1016_v17  ;;  %v1018_v22 = vmax.f32 %v1010_v18, 0.0  ;;  %v1025_v27 = vadd.f32 1e-05, %v1017_v24  ;;  %v1063_v8 = vld [vmem:[%s2276_s6 + $0x10] sm:$0xff] }
 0x2d6   : > { %1642 = vrsqrt.f32 %v1022_v16  ;;  %v1011_v45 = vsub.f32 %v995_v21, %v1003_v23  ;;  %v1065_v18 = vld [vmem:[%s2276_s6 + $0x20] sm:$0xff]  ;;  %v1066_v21 = vld [vmem:[%s2276_s6 + $0x28] sm:$0xff]  ;;  %v1067_v23 = vld [vmem:[%s2276_s6 + $0x30] sm:$0xff] }
 0x2d7   : > { %1644 = vrsqrt.f32 %v1023_v20  ;;  %v1026_v28 = vadd.f32 1e-05, %v1018_v22 }
 0x2d8   : > { %1646 = vrsqrt.f32 %v1024_v25  ;;  %v1019_v46 = vmax.f32 %v1011_v45, 0.0 }
 0x2d9   : > { %1648 = vrsqrt.f32 %v1025_v27 }
 0x2da   : > { %1650 = vrsqrt.f32 %v1026_v28  ;;  %v1027_v48 = vadd.f32 1e-05, %v1019_v46 }
 0x2dc   : > { %1652 = vrsqrt.f32 %v1027_v48 }
 0x2de   : > { %v1639_v51 = vpop.eup %1638 }
 0x2df   : > { %v1641_v53 = vpop.eup %1640  ;;  %v1044_v54 = vmul.f32 %v1639_v51, %v1036_v47 }
 0x2e0   : > { %v1643_v57 = vpop.eup %1642  ;;  %v1045_v58 = vmul.f32 %v1641_v53, %v1037_v49 }
 0x2e1   : > { %v1645_v61 = vpop.eup %1644  ;;  %1053 = vst.msk [vmem:[#allocation4] sm:$0xff] %vm1052_vm5, %v1044_v54  ;;  %v1046_v62 = vmul.f32 %v1643_v57, %v1038_v52  ;;  %v1069_v1 = vmul.f32 %v1044_v54, %v2087_v15 }
 0x2e2   : > { %v1647_v3 = vpop.eup %1646  ;;  %1054 = vst.msk [vmem:[#allocation4 + $0x8] sm:$0xff] %vm1052_vm5, %v1045_v58  ;;  %v1047_v5 = vmul.f32 %v1645_v61, %v1039_v55  ;;  %v1070_v7 = vmul.f32 %v1045_v58, %v2089_v19 }
 0x2e3   : > { %v1649_v9 = vpop.eup %1648  ;;  %1055 = vst.msk [vmem:[#allocation4 + $0x10] sm:$0xff] %vm1052_vm5, %v1046_v62  ;;  %v1048_v15 = vmul.f32 %v1647_v3, %v1040_v59  ;;  %v1077_v10 = vsub.f32 %v1061_v60, %v1069_v1  ;;  %v1071_v11 = vmul.f32 %v1046_v62, %v2093_v26 }
 0x2e4   : > { %v1651_v13 = vpop.eup %1650  ;;  %1056 = vst.msk [vmem:[#allocation4 + $0x18] sm:$0xff] %vm1052_vm5, %v1047_v5  ;;  %v1049_v16 = vmul.f32 %v1649_v9, %v1041_v0  ;;  %v1078_v19 = vsub.f32 %v1062_v2, %v1070_v7  ;;  %v1072_v17 = vmul.f32 %v1047_v5, %v2097_v44  ;;  %v1043_v44 = vld [vmem:[%s2275_s5 + $0x38] sm:$0xff] }
 0x2e5   : > { %1057 = vst.msk [vmem:[#allocation4 + $0x20] sm:$0xff] %vm1052_vm5, %v1048_v15  ;;  %v1050_v20 = vmul.f32 %v1651_v13, %v1042_v6  ;;  %1085 = vst.msk [vmem:[#allocation5] sm:$0xff] %vm1052_vm5, %v1077_v10  ;;  %v1079_v26 = vsub.f32 %v1063_v8, %v1071_v11  ;;  %v1073_v24 = vmul.f32 %v1048_v15, %v2101_v50 }
 0x2e6   : > { %1058 = vst.msk [vmem:[#allocation4 + $0x28] sm:$0xff] %vm1052_vm5, %v1049_v16  ;;  %1086 = vst.msk [vmem:[#allocation5 + $0x8] sm:$0xff] %vm1052_vm5, %v1078_v19  ;;  %v1080_v25 = vsub.f32 %v1064_v12, %v1072_v17  ;;  %v1074_v22 = vmul.f32 %v1049_v16, %v2105_v56  ;;  %v1653_v28 = vpop.eup %1652  ;;  %v1068_v56 = vld [vmem:[%s2276_s6 + $0x38] sm:$0xff] }
 0x2e7   : > { %1059 = vst.msk [vmem:[#allocation4 + $0x30] sm:$0xff] %vm1052_vm5, %v1050_v20  ;;  %1087 = vst.msk [vmem:[#allocation5 + $0x10] sm:$0xff] %vm1052_vm5, %v1079_v26  ;;  %v1081_v50 = vsub.f32 %v1065_v18, %v1073_v24  ;;  %v1075_v27 = vmul.f32 %v1050_v20, %v2109_v63  ;;  %v1051_v46 = vmul.f32 %v1653_v28, %v1043_v44 }
 0x2e8   : > { %1088 = vst.msk [vmem:[#allocation5 + $0x18] sm:$0xff] %vm1052_vm5, %v1080_v25  ;;  %v1082_v45 = vsub.f32 %v1066_v21, %v1074_v22 }
 0x2e9   : > { %1089 = vst.msk [vmem:[#allocation5 + $0x20] sm:$0xff] %vm1052_vm5, %v1081_v50  ;;  %v1083_v47 = vsub.f32 %v1067_v23, %v1075_v27  ;;  %1060 = vst.msk [vmem:[#allocation4 + $0x38] sm:$0xff] %vm1052_vm5, %v1051_v46  ;;  %v1076_v63 = vmul.f32 %v1051_v46, %v2115_v14 }
 0x2ea   : > { %1090 = vst.msk [vmem:[#allocation5 + $0x28] sm:$0xff] %vm1052_vm5, %v1082_v45 }
 0x2eb   : > { %1091 = vst.msk [vmem:[#allocation5 + $0x30] sm:$0xff] %vm1052_vm5, %v1083_v47  ;;  %v1084_v48 = vsub.f32 %v1068_v56, %v1076_v63 }
 0x2ed   : > { %1092 = vst.msk [vmem:[#allocation5 + $0x38] sm:$0xff] %vm1052_vm5, %v1084_v48 }
 0x2ee PF: > { %p1521_p5 = scmp.ne.s32.totalorder %s1746_s9, 1 }
 0x2ef   : > { %v1161_v49 = vld [vmem:[#allocation5] sm:$0xff] (!%p1521_p5)  ;;  %v1762_v52 = vmov (!%p1521_p5), 0   ;;  %v1162_v53 = vld [vmem:[#allocation5 + $0x8] sm:$0xff] (!%p1521_p5)  ;;  %v1100_v14 = vld [vmem:[#allocation4 + $0x18] sm:$0xff] (!%p1521_p5) }
 0x2f0   : > { %1096 = sbr.rel (%p1521_p5) target bundleno = 1167 (0x48f), region = 68  ;;  %v1097_v51 = vld [vmem:[#allocation4] sm:$0xff] (!%p1521_p5)  ;;  %1655 = vset.pattern.permute.xlu1 (!%p1521_p5), %v1762_v52  ;;  %1654 = vset.pattern.permute.xlu0 (!%p1521_p5), %v1762_v52  ;;  %v1098_v54 = vld [vmem:[#allocation4 + $0x8] sm:$0xff] (!%p1521_p5)  ;;  %v1099_v55 = vld [vmem:[#allocation4 + $0x10] sm:$0xff] (!%p1521_p5) }
 0x2f1   : > { %1171 = vperm.xlu1 (!%p1521_p5), %1655, %v1161_v49   ;;  %1107 = vperm.xlu0 (!%p1521_p5), %1654, %v1097_v51   ;;  %v1164_v57 = vld [vmem:[#allocation5 + $0x18] sm:$0xff] (!%p1521_p5)  ;;  %v1163_v58 = vld [vmem:[#allocation5 + $0x10] sm:$0xff] (!%p1521_p5)  ;;  %v1102_v59 = vld [vmem:[#allocation4 + $0x28] sm:$0xff] (!%p1521_p5) }
 0x2f2   : > { %1317 = vmatprep.mubr.bf16.mxu0 (!%p1521_p5), %v1762_v52  ;;  %v1101_v60 = vld [vmem:[#allocation4 + $0x20] sm:$0xff] (!%p1521_p5)  ;;  %v1166_v61 = vld [vmem:[#allocation5 + $0x28] sm:$0xff] (!%p1521_p5)  ;;  %v1104_v0 = vld [vmem:[#allocation4 + $0x38] sm:$0xff] (!%p1521_p5) }
 0x2f3   : > { %v1165_v62 = vld [vmem:[#allocation5 + $0x20] sm:$0xff] (!%p1521_p5)  ;;  %v1103_v1 = vld [vmem:[#allocation4 + $0x30] sm:$0xff] (!%p1521_p5) }
 0x2f4   : > { %v1168_v2 = vld [vmem:[#allocation5 + $0x38] sm:$0xff] (!%p1521_p5)  ;;  %v1167_v3 = vld [vmem:[#allocation5 + $0x30] sm:$0xff] (!%p1521_p5) }
 0x2f5   : > { %1176 = vperm.xlu1 (!%p1521_p5), %1655, %v1162_v53   ;;  %1112 = vperm.xlu0 (!%p1521_p5), %1654, %v1098_v54  }
 0x2f9   : > { %1122 = vperm.xlu1 %1655, %v1100_v14   ;;  %1117 = vperm.xlu0 %1654, %v1099_v55  }
 0x2fd   : > { %1186 = vperm.xlu1 %1655, %v1164_v57   ;;  %1181 = vperm.xlu0 %1654, %v1163_v58  }
 0x301   : > { %1132 = vperm.xlu1 %1655, %v1102_v59   ;;  %1127 = vperm.xlu0 %1654, %v1101_v60  }
 0x305   : > { %1196 = vperm.xlu1 %1655, %v1166_v61   ;;  %1191 = vperm.xlu0 %1654, %v1165_v62  }
 0x309   : > { %1142 = vperm.xlu1 %1655, %v1104_v0   ;;  %1137 = vperm.xlu0 %1654, %v1103_v1  }
 0x30d   : > { %1206 = vperm.xlu1 %1655, %v1168_v2   ;;  %1201 = vperm.xlu0 %1654, %v1167_v3  }
 0x370   : > { %v1172_v5 = vpop.permute.xlu1 %1171  ;;  %v1108_v6 = vpop.permute.xlu0 %1107 }
 0x371   : > { %v1145_v7 = vmul.f32 %v1108_v6, %v1987_v29  ;;  %v1146_v8 = vmul.f32 %v1108_v6, %v1989_v30 }
 0x373   : > { %v1209_v9 = vadd.f32 %v1172_v5, %v1145_v7  ;;  %v1210_v15 = vadd.f32 %v1172_v5, %v1146_v8 }
 0x374   : > { %v1177_v10 = vpop.permute.xlu1 %1176  ;;  %v1113_v11 = vpop.permute.xlu0 %1112 }
 0x375   : > { %v1147_v12 = vmul.f32 %v1113_v11, %v1991_v31  ;;  %v1148_v13 = vmul.f32 %v1113_v11, %v1993_v32  ;;  %v1242_v20 = vmul.f32 0.2, %v1210_v15  ;;  %v1241_v26 = vmul.f32 0.2, %v1209_v9 }
 0x376   : > { %vm1226_vm6 = vcmp.gt.f32.partialorder %v1210_v15, 0.0  ;;  %vm1225_vm7 = vcmp.gt.f32.partialorder %v1209_v9, 0.0 }
 0x377   : > { %v1211_v16 = vadd.f32 %v1177_v10, %v1147_v12  ;;  %v1212_v19 = vadd.f32 %v1177_v10, %v1148_v13  ;;  %v1258_v22 = vsel %vm1226_vm6, %v1210_v15, %v1242_v20  ;;  %v1257_v50 = vsel %vm1225_vm7, %v1209_v9, %v1241_v26 }
 0x378   : > { %v1123_v17 = vpop.permute.xlu1 %1122  ;;  %v1118_v18 = vpop.permute.xlu0 %1117 }
 0x379   : > { %vm1228_vm8 = vcmp.gt.f32.partialorder %v1212_v19, 0.0  ;;  %v1244_v29 = vmul.f32 0.2, %v1212_v19  ;;  %vm1227_vm9 = vcmp.gt.f32.partialorder %v1211_v16, 0.0  ;;  %v1243_v30 = vmul.f32 0.2, %v1211_v16 }
 0x37a   : > { %v1151_v24 = vmul.f32 %v1123_v17, %v1999_v35  ;;  %v1152_v21 = vmul.f32 %v1123_v17, %v2001_v4  ;;  %v1149_v31 = vmul.f32 %v1118_v18, %v1995_v33  ;;  %v1150_v32 = vmul.f32 %v1118_v18, %v1997_v34 }
 0x37b   : > { %v1260_v23 = vsel %vm1228_vm8, %v1212_v19, %v1244_v29  ;;  %v1259_v27 = vsel %vm1227_vm9, %v1211_v16, %v1243_v30 }
 0x37c   : > { %v1187_v44 = vpop.permute.xlu1 %1186  ;;  %v1182_v25 = vpop.permute.xlu0 %1181  ;;  %v1275_v56 = vpack.c.bf16 %v1260_v23, %v1258_v22  ;;  %v1274_v63 = vpack.c.bf16 %v1259_v27, %v1257_v50  ;;  %v1273_v22 = vld [vmem:[%s2277_s7] sm:$0x1] }
 0x37d   : > { %v1215_v28 = vadd.f32 %v1187_v44, %v1151_v24  ;;  %v1216_v45 = vadd.f32 %v1187_v44, %v1152_v21  ;;  %v1213_v46 = vadd.f32 %v1182_v25, %v1149_v31  ;;  %v1214_v47 = vadd.f32 %v1182_v25, %v1150_v32 }
 0x37e   : > { %1285 = vmatprep.subr.bf16.mxu0 %v1275_v56 }
 0x37f   : > { %vm1231_vm10 = vcmp.gt.f32.partialorder %v1215_v28, 0.0  ;;  %vm1232_vm11 = vcmp.gt.f32.partialorder %v1216_v45, 0.0  ;;  %v1247_v35 = vmul.f32 0.2, %v1215_v28  ;;  %v1248_v4 = vmul.f32 0.2, %v1216_v45  ;;  %1286 = vmatpush1.bf16.msra.mxu0 %v1274_v63 }
 0x380   : > { %vm1229_vm12 = vcmp.gt.f32.partialorder %v1213_v46, 0.0  ;;  %vm1230_vm13 = vcmp.gt.f32.partialorder %v1214_v47, 0.0  ;;  %v1245_v33 = vmul.f32 0.2, %v1213_v46  ;;  %v1246_v34 = vmul.f32 0.2, %v1214_v47  ;;  %v1133_v48 = vpop.permute.xlu1 %1132  ;;  %v1128_v49 = vpop.permute.xlu0 %1127 }
 0x381   : > { %v1155_v51 = vmul.f32 %v1133_v48, %v2007_v38  ;;  %v1156_v52 = vmul.f32 %v1133_v48, %v2009_v39  ;;  %v1264_v54 = vsel %vm1232_vm11, %v1216_v45, %v1248_v4  ;;  %v1263_v55 = vsel %vm1231_vm10, %v1215_v28, %v1247_v35 }
 0x382   : > { %v1262_v53 = vsel %vm1230_vm13, %v1214_v47, %v1246_v34  ;;  %v1261_v14 = vsel %vm1229_vm12, %v1213_v46, %v1245_v33  ;;  %v1153_v57 = vmul.f32 %v1128_v49, %v2003_v36  ;;  %v1154_v58 = vmul.f32 %v1128_v49, %v2005_v37 }
 0x383   : > { %v1277_v59 = vpack.c.bf16 %v1264_v54, %v1262_v53  ;;  %v1276_v60 = vpack.c.bf16 %v1263_v55, %v1261_v14  ;;  %v1763_v4 = vmov 1966171168   ;;  %v1344_v34 = vlaneseq }
 0x384   : > { %v1197_v61 = vpop.permute.xlu1 %1196  ;;  %v1192_v62 = vpop.permute.xlu0 %1191  ;;  %v1342_v33 = vunpack.c.l.s4 %v1763_v4 }
 0x385   : > { %v1219_v0 = vadd.f32 %v1197_v61, %v1155_v51  ;;  %v1220_v1 = vadd.f32 %v1197_v61, %v1156_v52  ;;  %1287 = vmatprep.subr.bf16.mxu0 %v1277_v59  ;;  %v1217_v2 = vadd.f32 %v1192_v62, %v1153_v57  ;;  %v1218_v38 = vadd.f32 %v1192_v62, %v1154_v58 }
 0x386   : > { %1288 = vmatpush1.bf16.msra.mxu0 %v1276_v60  ;;  %v1343_v48 = vunpack.c.0.s8 %v1342_v33  ;;  %v1345_v49 = vshrl.u32 %v1344_v34, 7 }
 0x387   : > { %vm1235_vm14 = vcmp.gt.f32.partialorder %v1219_v0, 0.0  ;;  %vm1236_vm15 = vcmp.gt.f32.partialorder %v1220_v1, 0.0  ;;  %v1251_v39 = vmul.f32 0.2, %v1219_v0  ;;  %v1252_v3 = vmul.f32 0.2, %v1220_v1 }
 0x388   : > { %vm1233_vm0 = vcmp.gt.f32.partialorder %v1217_v2, 0.0  ;;  %vm1234_vm1 = vcmp.gt.f32.partialorder %v1218_v38, 0.0  ;;  %v1249_v5 = vmul.f32 0.2, %v1217_v2  ;;  %v1250_v36 = vmul.f32 0.2, %v1218_v38  ;;  %v1143_v6 = vpop.permute.xlu1 %1142  ;;  %v1138_v37 = vpop.permute.xlu0 %1137 }
 0x389   : > { %v1159_v7 = vmul.f32 %v1143_v6, %v2015_v42  ;;  %v1160_v8 = vmul.f32 %v1143_v6, %v2017_v43  ;;  %v1268_v15 = vsel %vm1236_vm15, %v1220_v1, %v1252_v3  ;;  %v1267_v11 = vsel %vm1235_vm14, %v1219_v0, %v1251_v39 }
 0x38a   : > { %v1266_v9 = vsel %vm1234_vm1, %v1218_v38, %v1250_v36  ;;  %v1265_v10 = vsel %vm1233_vm0, %v1217_v2, %v1249_v5  ;;  %v1157_v12 = vmul.f32 %v1138_v37, %v2011_v40  ;;  %v1158_v13 = vmul.f32 %v1138_v37, %v2013_v41 }
 0x38b   : > { %v1279_v16 = vpack.c.bf16 %v1268_v15, %v1266_v9  ;;  %v1278_v19 = vpack.c.bf16 %v1267_v11, %v1265_v10  ;;  %v1346_v52 = vsub.s32 %v1343_v48, %v1345_v49 }
 0x38c   : > { %v1207_v17 = vpop.permute.xlu1 %1206  ;;  %v1202_v18 = vpop.permute.xlu0 %1201 }
 0x38d   : > { %v1223_v20 = vadd.f32 %v1207_v17, %v1159_v7  ;;  %v1224_v26 = vadd.f32 %v1207_v17, %v1160_v8  ;;  %1289 = vmatprep.subr.bf16.mxu0 %v1279_v16  ;;  %v1221_v29 = vadd.f32 %v1202_v18, %v1157_v12  ;;  %v1222_v30 = vadd.f32 %v1202_v18, %v1158_v13 }
 0x38e   : > { %1290 = vmatpush1.bf16.msra.mxu0 %v1278_v19 }
 0x38f   : > { %vm1239_vm2 = vcmp.gt.f32.partialorder %v1223_v20, 0.0  ;;  %vm1240_vm4 = vcmp.gt.f32.partialorder %v1224_v26, 0.0  ;;  %v1255_v42 = vmul.f32 0.2, %v1223_v20  ;;  %v1256_v43 = vmul.f32 0.2, %v1224_v26 }
 0x390   : > { %vm1237_vm5 = vcmp.gt.f32.partialorder %v1221_v29, 0.0  ;;  %vm1238_vm6 = vcmp.gt.f32.partialorder %v1222_v30, 0.0  ;;  %v1253_v24 = vmul.f32 0.2, %v1221_v29  ;;  %v1254_v40 = vmul.f32 0.2, %v1222_v30 }
 0x391   : > { %v1272_v21 = vsel %vm1240_vm4, %v1224_v26, %v1256_v43  ;;  %v1271_v41 = vsel %vm1239_vm2, %v1223_v20, %v1255_v42 }
 0x392   : > { %v1270_v31 = vsel %vm1238_vm6, %v1222_v30, %v1254_v40  ;;  %v1269_v32 = vsel %vm1237_vm5, %v1221_v29, %v1253_v24 }
 0x393   : > { %v1281_v44 = vpack.c.bf16 %v1272_v21, %v1270_v31  ;;  %v1280_v25 = vpack.c.bf16 %v1271_v41, %v1269_v32 }
 0x395   : > { %1291 = vmatprep.subr.bf16.mxu0 %v1281_v44 }
 0x396   : > { %1292 = vmatpush1.bf16.msra.mxu0 %v1280_v25 }
 0x399   : > { %1522 = vmatmul.mubr.msk.bf16.vlgmr.msra.gmra.mrb[0].mxu0 %vm755_vm3, %v1273_v22  ;;  %vm1358_vm3 = vcmp.lt.s32.totalorder %v1344_v34, 256 }
 0x46c   : > { %v1319_v23 = vpop.f32.mrb[0].mxu0 }
 0x46d   : > { %v1523_v50 = vmul.f32 -1.442695, %v1319_v23  ;;  %v1321_v27 = vpop.f32.mrb[1].mxu0 }
 0x46e   : > { %v1524_v28 = vmul.f32 -1.442695, %v1321_v27  ;;  %v1323_v45 = vpop.f32.mrb[2].mxu0 }
 0x46f   : > { %1656 = vpow2.f32 %v1523_v50  ;;  %v1324_v46 = vpop.f32.mrb[3].mxu0 }
 0x470   : > { %1658 = vpow2.f32 %v1524_v28 }
 0x479   : > { %v1657_v47 = vpop.eup %1656 }
 0x47a   : > { %v1659_v56 = vpop.eup %1658  ;;  %v1332_v63 = vadd.f32 1.0, %v1657_v47 }
 0x47b   : > { %v1333_v35 = vadd.f32 1.0, %v1659_v56 }
 0x47c   : > { %1660 = vrcp.f32 %v1332_v63 }
 0x47d   : > { %1662 = vrcp.f32 %v1333_v35 }
 0x486   : > { %v1661_v51 = vpop.eup %1660 }
 0x487   : > { %v1663_v53 = vpop.eup %1662 }
 0x488   : > { %v1340_v54 = vcombine.low %v1661_v51, %v1663_v53 }
 0x48a   : > { %v1347_v14 = vrot.slane %v1340_v54, %v1346_v52 }
 0x48c   : > { %v1354_v55 = vrot.slane %v1347_v14, %v1346_v52 }
 0x48e   : > { %1360 = vst.msk [vmem:[%s360_s15] sm:$0x3] %vm1358_vm3, %v1354_v55 }
 0x48f PF: > { %s1369_s16 = smul.u32 %s1742_s30, %s1746_s9  ;;  %s1380_s14 = sshll.u32 %s360_s15, 4  ;;  %s2219_s14 = int_to_ptr.vmem [resolvable:$true] %s1380_s14 }
 0x490   : > { %s1362_s26 = scalar_lea.sflag [#allocation7], %s358_s24  ;;  %s1664_s13 = scalar_lea.vmem %s2219_s14, 32 }
 0x491   : > { %s1532_s17 = sshll.u32 %s1369_s16, 5  ;;  %p1665_p7 = scmp.ne.s32.totalorder %s2219_s14, %s1664_s13 }
 0x492   : > { %s1378_s22 = scalar_lea.hbm %s2278_s8, %s1532_s17  ;;  %s1764_s30 = smov [#allocation6]  }
 0x493   : > { %p1666_p9 = pnand %p1665_p7, %p1863_p6  ;;  %s1668_s9 = sshll.u32 %s1764_s30, 4  ;;  %s1669_s9 = int_to_ptr.vmem [resolvable:$false] %s1668_s9 }
 0x494   : > { %s1670_s15 = scalar_lea.vmem %s1669_s9, 64  ;;  %p1671_p11 = scmp.lt.s32.totalorder %s2219_s14, %s1669_s9 }
 0x495   : > { %p1667_p10 = pneg %p1666_p9  ;;  %p1672_p12 = scmp.lt.s32.totalorder %s1670_s15, %s1664_s13 }
 0x497   : > { %p1673_p13 = por %p1672_p12, %p1671_p11 }
 0x499   : > { %p1674_p0 = pnand %p1673_p13, %p1667_p10 }
 0x49b   : > { %1677 = shalt.err (!%p1674_p0)
}
 0x49c   : > { %s1678_s25 = scalar_lea.hbm %s1378_s22, 32  ;;  %s1682_s17 = scalar_lea.hbm %s2278_s8, 64 }
 0x49d   : > { %p1679_p1 = scmp.ne.s32.totalorder %s1378_s22, %s1678_s25  ;;  %p1683_p4 = scmp.lt.u32.totalorder %s1378_s22, %s2278_s8 }
 0x49e   : > { %p1684_p5 = scmp.lt.u32.totalorder %s1682_s17, %s1678_s25  ;;  %p1686_p9 = scmp.lt.u32.totalorder %s1678_s25, %s1378_s22 }
 0x49f   : > { %p1680_p2 = pnand %p1679_p1, %p1863_p6 }
 0x4a0   : > { %p1685_p7 = por %p1684_p5, %p1683_p4 }
 0x4a1   : > { %p1681_p3 = pneg %p1680_p2 }
 0x4a2   : > { %p1687_p11 = por %p1686_p9, %p1685_p7 }
 0x4a4   : > { %p1688_p10 = pnand %p1687_p11, %p1681_p3 }
 0x4a6   : > { %1691 = shalt.err (!%p1688_p10)
}
 0x4a7   : > { %1551 = dma.vmem_to_hbm [thread:$0]  (%p1863_p6), %s2219_s14, 32, %s1378_s22, %s1362_s26  }
 0x4a8 PF: > { %p1557_p12 = scmp.ge.s32.totalorder %s1758_s12, 2  ;;  %s1392_s13 = sand.u32 1, %s1730_s27  }
 0x4a9   : > { %s1393_s30 = scalar_lea.sflag [#allocation7], %s1392_s13 }
 0x4aa   : > { %p1554_p13 = pnand %p1557_p12, %p1870_p8 }
 0x4ac   : > { %1725 = dma.done.wait (!%p1554_p13), %s1393_s30, 32  }
 0x4ad   : > { %1727 = vsyncadd (!%p1554_p13), %s1393_s30, 4294967264  ;;  %s21_s12 = sadd.s32 1, %s1758_s12   ;;  %s2285_s18 = sld [smem:[#allocation9_spill]] }
 0x4ae   : > { %p18_p0 = scmp.ge.s32.totalorder %s21_s12, 6   ;;  %s2286_s14 = sld [smem:[#allocation10_spill]] }
 0x4af   : > { %s2287_s27 = smov %s1734_s28  ;;  %s2288_s28 = smov %s1738_s29 }
 0x4b0   : > { %s2289_s29 = smov %s1879_s23  ;;  %s2290_s30 = smov %s1750_s10 }
 0x4b1   : > { %s2291_s9 = smov %s1754_s11  ;;  %20 = sbr.rel (!%p18_p0) target bundleno = 5 (0x5), region = 106 }
 0x4b3   : > { %s2292_s10 = smov %s2285_s18 }
 0x4b4   : > { %s2293_s11 = smov %s2286_s14 }
 0x4b8   :  { %1398 = vsyncpa [#allocation7], 1 }
 0x4b9   :  { %1400 = vsyncpa [#allocation7 + $0x1], 1 }

</bundles_post_ra>
